<compile_context>
chip_gen: v5e
topology: v5e:2x2
jax: 0.10.0
libtpu: 0.0.40
codegen_flags: <defaults>
</compile_context>

<pallas_src>
import functools
import math

import jax
import jax.numpy as jnp
from jax.experimental import pallas as pl
from jax.experimental.pallas import tpu as pltpu


def _round_up(a, m):
    return ((a + m - 1) // m) * m


def _compiler_params(semantics, est_block_bytes):
    # explicit scoped-VMEM limit (v7x has 64 MiB physical / 32 MiB default)
    limit = int(min(max(2 * est_block_bytes + (8 << 20), 32 << 20), 64 << 20))
    return pltpu.CompilerParams(dimension_semantics=semantics,
                                vmem_limit_bytes=limit)


# ---------------------------------------------------------------------------
# Kernel 1 (fused path): 1x1 conv + exact two-pass GroupNorm, one sample/step
# ---------------------------------------------------------------------------
def _make_fused_proj_gn_kernel(hw, hw_pad, eps):
    def kernel(x_ref, w_ref, b_ref, gavg_ref, gamma_ref, beta_ref, o_ref):
        x = x_ref[0]                                               # [hw_pad, Cin] bf16
        y = jnp.dot(x, w_ref[...], preferred_element_type=jnp.float32) + b_ref[...]
        if hw_pad != hw:
            rows = jax.lax.broadcasted_iota(jnp.int32, (hw_pad, 1), 0)
            valid = (rows < hw).astype(jnp.float32)
            yv = y * valid
        else:
            valid = None
            yv = y
        # per-channel sums -> group-mean broadcast via block-diagonal averaging
        ch_sum = jnp.sum(yv, axis=0, keepdims=True)                # [1, Cout]
        mean_c = jnp.dot(ch_sum, gavg_ref[...],
                         preferred_element_type=jnp.float32)       # [1, Cout]
        dev = y - mean_c
        dv = dev if valid is None else dev * valid
        ch_sq = jnp.sum(dv * dv, axis=0, keepdims=True)            # exact two-pass
        var_c = jnp.dot(ch_sq, gavg_ref[...],
                        preferred_element_type=jnp.float32)
        inv_c = jax.lax.rsqrt(var_c + eps)
        o_ref[0] = (dev * inv_c * gamma_ref[...] + beta_ref[...]).astype(o_ref.dtype)
    return kernel


# ---------------------------------------------------------------------------
# Kernel 1a/1b (fallback path): HW-tiled projection + stats, then normalize
# ---------------------------------------------------------------------------
def _proj_stats_kernel(x_ref, w_ref, b_ref, y_ref, sum_ref, sq_ref):
    x = x_ref[0]                                                   # [tile, Cin] bf16
    y = jnp.dot(x, w_ref[...], preferred_element_type=jnp.float32) + b_ref[...]
    y_ref[0] = y.astype(y_ref.dtype)                               # bf16 intermediate

    @pl.when(pl.program_id(1) == 0)
    def _():
        sum_ref[...] = jnp.zeros_like(sum_ref)
        sq_ref[...] = jnp.zeros_like(sq_ref)

    sum_ref[0] += jnp.sum(y, axis=0, keepdims=True)                # f32 accumulation
    sq_ref[0] += jnp.sum(y * y, axis=0, keepdims=True)


def _gn_norm_kernel(y_ref, mean_ref, inv_ref, gamma_ref, beta_ref, o_ref):
    y = y_ref[0].astype(jnp.float32)
    o_ref[0] = ((y - mean_ref[0]) * inv_ref[0] * gamma_ref[...]
                + beta_ref[...]).astype(o_ref.dtype)


def input_proj(x_nchw, w, b, gamma, beta, *, num_groups=32, eps=1e-5,
               tile_hw=None, force_two_pass=False,
               fused_vmem_budget=20 << 20, out_dtype=jnp.bfloat16):
    """1x1 Conv2d + GroupNorm. x_nchw: [N, Cin, H, W] -> channels-last [N, H*W, Cout]."""
    n, cin, h, wd = x_nchw.shape
    cout = w.shape[1]
    assert cout % num_groups == 0
    hw = h * wd
    cg = cout // num_groups
    cnt = float(hw * cg)

    # channels-last, spatial flattened; bf16 matmul operands, f32 accumulate.
    # TODO(synk): NCHW->NHWC transpose + bf16 cast is one XLA copy of the input;
    # consuming NCHW directly would need a transposed-LHS dot in-kernel
    # (possible per-tile XLU transpose) and is not done here.
    x = jnp.transpose(x_nchw, (0, 2, 3, 1)).reshape(n, hw, cin).astype(jnp.bfloat16)
    w_bf = w.astype(jnp.bfloat16)

    hw8 = _round_up(hw, 8)
    fused_bytes = (2 * hw8 * cin * 2            # x block, double-buffered
                   + 2 * hw8 * cout * 2         # out block, double-buffered
                   + hw8 * cout * 4             # live f32 projected value
                   + cin * cout * 2 + cout * cout * 4)
    use_fused = (not force_two_pass) and fused_bytes <= fused_vmem_budget

    if use_fused:
        hw_pad = hw8
        if hw_pad != hw:
            x = jnp.pad(x, ((0, 0), (0, hw_pad - hw), (0, 0)))
        # block-diagonal group-averaging matrix: A[c1,c2] = 1/cnt if same group
        grp = jnp.arange(cout) // cg
        gavg = (grp[:, None] == grp[None, :]).astype(jnp.float32) / cnt

        flops = 2 * n * hw_pad * cin * cout + 4 * n * cout * cout + 8 * n * hw_pad * cout
        bytes_acc = (n * hw_pad * cin * 2 + n * hw_pad * cout * 2
                     + cin * cout * 2 + cout * cout * 4 + 4 * cout * 4)
        out = pl.pallas_call(
            _make_fused_proj_gn_kernel(hw, hw_pad, eps),
            out_shape=jax.ShapeDtypeStruct((n, hw_pad, cout), out_dtype),
            grid=(n,),
            in_specs=[
                pl.BlockSpec((1, hw_pad, cin), lambda i: (i, 0, 0)),
                pl.BlockSpec((cin, cout), lambda i: (0, 0)),
                pl.BlockSpec((1, cout), lambda i: (0, 0)),
                pl.BlockSpec((cout, cout), lambda i: (0, 0)),
                pl.BlockSpec((1, cout), lambda i: (0, 0)),
                pl.BlockSpec((1, cout), lambda i: (0, 0)),
            ],
            out_specs=pl.BlockSpec((1, hw_pad, cout), lambda i: (i, 0, 0)),
            compiler_params=_compiler_params(("parallel",), fused_bytes),
            cost_estimate=pl.CostEstimate(flops=int(flops),
                                          transcendentals=int(n * cout),
                                          bytes_accessed=int(bytes_acc)),
        )(x, w_bf, b, gavg, gamma, beta)
        return out[:, :hw, :] if hw_pad != hw else out

    # ----- two-pass fallback (per-sample level too large for resident VMEM) ---
    if tile_hw is None:
        tile_hw = min(1024, hw8)
    tile_hw = max(8, (tile_hw // 8) * 8)
    hw_pad = _round_up(hw, tile_hw)
    n_tiles = hw_pad // tile_hw
    if hw_pad != hw:
        x = jnp.pad(x, ((0, 0), (0, hw_pad - hw), (0, 0)))

    blk1 = 2 * (tile_hw * cin * 2 + tile_hw * cout * 2) + 4 * cout * 4
    flops1 = 2 * n * hw_pad * cin * cout
    bytes1 = (n * hw_pad * cin * 2 + n * hw_pad * cout * 2
              + cin * cout * 2 + 2 * n * cout * 4)

    y, ch_sum, ch_sq = pl.pallas_call(
        _proj_stats_kernel,
        out_shape=(jax.ShapeDtypeStruct((n, hw_pad, cout), out_dtype),
                   jax.ShapeDtypeStruct((n, 1, cout), jnp.float32),
                   jax.ShapeDtypeStruct((n, 1, cout), jnp.float32)),
        grid=(n, n_tiles),
        in_specs=[
            pl.BlockSpec((1, tile_hw, cin), lambda i, j: (i, j, 0)),
            pl.BlockSpec((cin, cout), lambda i, j: (0, 0)),
            pl.BlockSpec((1, cout), lambda i, j: (0, 0)),
        ],
        out_specs=(
            pl.BlockSpec((1, tile_hw, cout), lambda i, j: (i, j, 0)),
            pl.BlockSpec((1, 1, cout), lambda i, j: (i, 0, 0)),
            pl.BlockSpec((1, 1, cout), lambda i, j: (i, 0, 0)),
        ),
        compiler_params=_compiler_params(("parallel", "arbitrary"), blk1),
        cost_estimate=pl.CostEstimate(flops=int(flops1), transcendentals=0,
                                      bytes_accessed=int(bytes1)),
    )(x, w_bf, b)

    # exact correction for zero-padded HW rows (each contributes exactly b, b^2)
    pad_rows = hw_pad - hw
    if pad_rows:
        ch_sum = ch_sum - pad_rows * b.reshape(1, 1, cout)
        ch_sq = ch_sq - pad_rows * (b * b).reshape(1, 1, cout)

    # Tiny per-sample group reduce of the [N, 2, Cout] stats in the wrapper.
    # TODO(synk): fallback path still uses E[x^2]-E[x]^2 in f32; the fused path
    # (default whenever a level fits VMEM) uses the exact two-pass formulation.
    sum_g = ch_sum.reshape(n, num_groups, cg).sum(-1)
    sq_g = ch_sq.reshape(n, num_groups, cg).sum(-1)
    mean_g = sum_g / cnt
    var_g = jnp.maximum(sq_g / cnt - mean_g * mean_g, 0.0)
    inv_g = jax.lax.rsqrt(var_g + eps)
    mean_c = jnp.repeat(mean_g, cg, axis=-1).reshape(n, 1, cout)
    inv_c = jnp.repeat(inv_g, cg, axis=-1).reshape(n, 1, cout)

    blk2 = 4 * tile_hw * cout * 2 + 4 * cout * 4
    out = pl.pallas_call(
        _gn_norm_kernel,
        out_shape=jax.ShapeDtypeStruct((n, hw_pad, cout), out_dtype),
        grid=(n, n_tiles),
        in_specs=[
            pl.BlockSpec((1, tile_hw, cout), lambda i, j: (i, j, 0)),
            pl.BlockSpec((1, 1, cout), lambda i, j: (i, 0, 0)),
            pl.BlockSpec((1, 1, cout), lambda i, j: (i, 0, 0)),
            pl.BlockSpec((1, cout), lambda i, j: (0, 0)),
            pl.BlockSpec((1, cout), lambda i, j: (0, 0)),
        ],
        out_specs=pl.BlockSpec((1, tile_hw, cout), lambda i, j: (i, j, 0)),
        input_output_aliases={0: 0},            # normalize in place (y buffer)
        compiler_params=_compiler_params(("parallel", "parallel"), blk2),
        cost_estimate=pl.CostEstimate(flops=int(4 * n * hw_pad * cout),
                                      transcendentals=0,
                                      bytes_accessed=int(2 * n * hw_pad * cout * 2)),
    )(y, mean_c, inv_c, gamma, beta)
    return out[:, :hw, :] if hw_pad != hw else out


# ---------------------------------------------------------------------------
# Kernel 2: prediction heads, row-tiled over all L * B * T * Q rows
# ---------------------------------------------------------------------------
def _head_kernel(x_ref, xb_ref, wc_ref, bc_ref, w1_ref, b1_ref,
                 w2_ref, b2_ref, w3_ref, b3_ref, logits_ref, box_ref):
    x = x_ref[...]                                                 # [TR, D] bf16
    xb = xb_ref[...]                                               # [TR, D] bf16

    # class_embed (lane-padded to a multiple of 128)
    logits_ref[...] = (jnp.dot(x, wc_ref[...], preferred_element_type=jnp.float32)
                       + bc_ref[...])

    # bbox_embed: 3-layer MLP, ReLU on the first two layers (lane-padded output)
    h = jnp.maximum(
        jnp.dot(xb, w1_ref[...], preferred_element_type=jnp.float32) + b1_ref[...], 0.0)
    h = jnp.maximum(
        jnp.dot(h.astype(jnp.bfloat16), w2_ref[...],
                preferred_element_type=jnp.float32) + b2_ref[...], 0.0)
    box_ref[...] = (jnp.dot(h.astype(jnp.bfloat16), w3_ref[...],
                            preferred_element_type=jnp.float32) + b3_ref[...])


def detr_heads(hs, hs_box, refs, params, *, num_frames, num_queries, tile_rows=1024):
    """hs, hs_box: [L, B, T*Q, D]; refs: [L, B, T*Q, 2] -> (logits, coords)."""
    L, B, TQ, D = hs.shape
    C = params["class_w"].shape[1]
    R = L * B * TQ
    LANE = 128
    c_pad = _round_up(C, LANE)
    box_pad = LANE

    TR = max(8, (min(tile_rows, _round_up(R, 8)) // 8) * 8)
    R_pad = _round_up(R, TR)
    grid_r = R_pad // TR

    x = hs.reshape(R, D)
    xb = hs_box.reshape(R, D)
    if R_pad != R:
        x = jnp.pad(x, ((0, R_pad - R), (0, 0)))
        xb = jnp.pad(xb, ((0, R_pad - R), (0, 0)))
    x = x.astype(jnp.bfloat16)
    xb = xb.astype(jnp.bfloat16)

    wc = jnp.zeros((D, c_pad), jnp.float32).at[:, :C].set(params["class_w"]).astype(jnp.bfloat16)
    bc = jnp.zeros((1, c_pad), jnp.float32).at[:, :C].set(params["class_b"])
    w1 = params["bbox_w1"].astype(jnp.bfloat16)
    b1 = params["bbox_b1"]
    w2 = params["bbox_w2"].astype(jnp.bfloat16)
    b2 = params["bbox_b2"]
    w3 = jnp.zeros((D, box_pad), jnp.float32).at[:, :4].set(params["bbox_w3"]).astype(jnp.bfloat16)
    b3 = jnp.zeros((1, box_pad), jnp.float32).at[:, :4].set(params["bbox_b3"])

    blk = (4 * TR * D * 2                                 # x, xb double-buffered
           + 2 * TR * (c_pad + box_pad) * 4               # outputs double-buffered
           + D * (c_pad + 2 * D + box_pad) * 2)           # resident weights
    flops = 2 * R_pad * D * (c_pad + D + D + box_pad)
    bytes_acc = (2 * R_pad * D * 2 + R_pad * (c_pad + box_pad) * 4
                 + D * (c_pad + 2 * D + box_pad) * 2
                 + (c_pad + 2 * D + box_pad) * 4)

    logits_pad, box_tmp = pl.pallas_call(
        _head_kernel,
        out_shape=(jax.ShapeDtypeStruct((R_pad, c_pad), jnp.float32),
                   jax.ShapeDtypeStruct((R_pad, box_pad), jnp.float32)),
        grid=(grid_r,),
        in_specs=[
            pl.BlockSpec((TR, D), lambda i: (i, 0)),
            pl.BlockSpec((TR, D), lambda i: (i, 0)),
            pl.BlockSpec((D, c_pad), lambda i: (0, 0)),
            pl.BlockSpec((1, c_pad), lambda i: (0, 0)),
            pl.BlockSpec((D, D), lambda i: (0, 0)),
            pl.BlockSpec((1, D), lambda i: (0, 0)),
            pl.BlockSpec((D, D), lambda i: (0, 0)),
            pl.BlockSpec((1, D), lambda i: (0, 0)),
            pl.BlockSpec((D, box_pad), lambda i: (0, 0)),
            pl.BlockSpec((1, box_pad), lambda i: (0, 0)),
        ],
        out_specs=(
            pl.BlockSpec((TR, c_pad), lambda i: (i, 0)),
            pl.BlockSpec((TR, box_pad), lambda i: (i, 0)),
        ),
        compiler_params=_compiler_params(("parallel",), blk),
        cost_estimate=pl.CostEstimate(flops=int(flops), transcendentals=0,
                                      bytes_accessed=int(bytes_acc)),
    )(x, xb, wc, bc, w1, b1, w2, b2, w3, b3)

    logits = logits_pad[:R, :C].reshape(L, B, TQ, C)

    # tiny wrapper epilogue: inverse_sigmoid(reference) add on [R, 2], frame
    # mean + sigmoid on [L, B, T, Q, 4] (keeps the padded-ref HBM read out of
    # the bandwidth-bound head kernel).
    box4 = box_tmp[:R, :4]
    r = jnp.clip(refs.reshape(R, 2).astype(jnp.float32), 0.0, 1.0)
    inv_sig = jnp.log(jnp.maximum(r, 1e-5)) - jnp.log(jnp.maximum(1.0 - r, 1e-5))
    box4 = jnp.concatenate([box4[:, :2] + inv_sig, box4[:, 2:]], axis=-1)
    tmp = box4.reshape(L, B, num_frames, num_queries, 4)
    coords = jax.nn.sigmoid(jnp.mean(tmp, axis=2))                 # [L, B, Q, 4]
    return logits, coords


# ---------------------------------------------------------------------------
# Deterministic parameter init (mirrors the PyTorch __init__)
# ---------------------------------------------------------------------------
def init_params(key, *, in_channels, hidden_dim, num_classes):
    k1, k2, k3, k4 = jax.random.split(key, 4)
    bound = math.sqrt(6.0 / (in_channels + hidden_dim))            # xavier_uniform
    proj_w = jax.random.uniform(k1, (in_channels, hidden_dim), jnp.float32, -bound, bound)
    proj_b = jnp.zeros((1, hidden_dim), jnp.float32)
    gn_gamma = jnp.ones((1, hidden_dim), jnp.float32)
    gn_beta = jnp.zeros((1, hidden_dim), jnp.float32)
    lb = 1.0 / math.sqrt(hidden_dim)
    class_w = jax.random.uniform(k2, (hidden_dim, num_classes), jnp.float32, -lb, lb)
    bias_value = -math.log((1 - 0.01) / 0.01)
    class_b = jnp.full((1, num_classes), bias_value, jnp.float32)
    bbox_w1 = jax.random.uniform(k3, (hidden_dim, hidden_dim), jnp.float32, -lb, lb)
    bbox_b1 = jnp.zeros((1, hidden_dim), jnp.float32)
    bbox_w2 = jax.random.uniform(k4, (hidden_dim, hidden_dim), jnp.float32, -lb, lb)
    bbox_b2 = jnp.zeros((1, hidden_dim), jnp.float32)
    bbox_w3 = jnp.zeros((hidden_dim, 4), jnp.float32)               # last layer zero-init
    bbox_b3 = jnp.array([[0.0, 0.0, -2.0, -2.0]], jnp.float32)
    return dict(proj_w=proj_w, proj_b=proj_b, gn_gamma=gn_gamma, gn_beta=gn_beta,
                class_w=class_w, class_b=class_b,
                bbox_w1=bbox_w1, bbox_b1=bbox_b1,
                bbox_w2=bbox_w2, bbox_b2=bbox_b2,
                bbox_w3=bbox_w3, bbox_b3=bbox_b3)


# ---------------------------------------------------------------------------
# Forward glue (mirrors DeformableDETR.forward around the external submodules)
# ---------------------------------------------------------------------------
def deformable_detr_forward(feat_nchw, hs, hs_box, refs, params,
                            *, num_frames, num_queries, aux_loss=True,
                            proj_tile_hw=None, head_tile_rows=1024,
                            force_two_pass_proj=False):
    T = num_frames
    n, _, h, w = feat_nchw.shape
    # input_proj + GroupNorm on the backbone feature, channels-last bf16 output
    # [B, T, H, W, C] (the transformer consumes flattened spatial anyway).
    src_proj = input_proj(feat_nchw, params["proj_w"], params["proj_b"],
                          params["gn_gamma"], params["gn_beta"],
                          tile_hw=proj_tile_hw, force_two_pass=force_two_pass_proj)
    src_proj = src_proj.reshape(n // T, T, h, w, -1)

    logits, coords = detr_heads(hs, hs_box, refs, params,
                                num_frames=T, num_queries=num_queries,
                                tile_rows=head_tile_rows)
    L, B = hs.shape[0], hs.shape[1]
    logits = logits.reshape(L, B, T, num_queries, -1)

    outputs = {"pred_logits": logits[-1], "pred_boxes": coords[-1]}
    if aux_loss:
        outputs["aux_outputs"] = [
            {"pred_logits": logits[i], "pred_boxes": coords[i]} for i in range(L - 1)
        ]
    return outputs, src_proj


# ---------------------------------------------------------------------------
# Plain-JAX reference (same bf16 matmul casts) for a correctness check
# ---------------------------------------------------------------------------
def _reference_forward(feat_nchw, hs, hs_box, refs, params, *, num_frames,
                       num_queries, num_groups=32, eps=1e-5):
    n, cin, h, w = feat_nchw.shape
    cout = params["proj_w"].shape[1]
    hw = h * w
    x = jnp.transpose(feat_nchw, (0, 2, 3, 1)).reshape(n, hw, cin)
    y = (jnp.dot(x.astype(jnp.bfloat16), params["proj_w"].astype(jnp.bfloat16),
                 preferred_element_type=jnp.float32) + params["proj_b"])
    cg = cout // num_groups
    yg = y.reshape(n, hw, num_groups, cg)
    mean = yg.mean(axis=(1, 3), keepdims=True)
    var = jnp.mean((yg - mean) ** 2, axis=(1, 3), keepdims=True)
    yn = ((yg - mean) * jax.lax.rsqrt(var + eps)).reshape(n, hw, cout)
    yn = yn * params["gn_gamma"] + params["gn_beta"]
    src_proj = yn.reshape(n // num_frames, num_frames, h, w, cout)

    L, B, TQ, D = hs.shape
    C = params["class_w"].shape[1]
    x2 = hs.reshape(-1, D).astype(jnp.bfloat16)
    xb2 = hs_box.reshape(-1, D).astype(jnp.bfloat16)
    logits = (jnp.dot(x2, params["class_w"].astype(jnp.bfloat16),
                      preferred_element_type=jnp.float32) + params["class_b"])
    hmid = jnp.maximum(jnp.dot(xb2, params["bbox_w1"].astype(jnp.bfloat16),
                               preferred_element_type=jnp.float32) + params["bbox_b1"], 0.0)
    hmid = jnp.maximum(jnp.dot(hmid.astype(jnp.bfloat16),
                               params["bbox_w2"].astype(jnp.bfloat16),
                               preferred_element_type=jnp.float32) + params["bbox_b2"], 0.0)
    tmp = (jnp.dot(hmid.astype(jnp.bfloat16), params["bbox_w3"].astype(jnp.bfloat16),
                   preferred_element_type=jnp.float32) + params["bbox_b3"])
    r = jnp.clip(refs.reshape(-1, 2), 0.0, 1.0)
    inv = jnp.log(jnp.maximum(r, 1e-5)) - jnp.log(jnp.maximum(1.0 - r, 1e-5))
    tmp = jnp.concatenate([tmp[:, :2] + inv, tmp[:, 2:]], axis=-1)
    tmp = tmp.reshape(L, B, num_frames, num_queries, 4)
    coords = jax.nn.sigmoid(jnp.mean(tmp, axis=2))
    return logits.reshape(L, B, TQ, C), coords, src_proj


if __name__ == "__main__":
    B, T, Q, D, L = 2, 2, 8, 64, 3          # batch, frames, queries, hidden, dec layers
    NUM_CLASSES = 8
    CIN, H, W = 4, 16, 16                   # backbone feature channels / spatial
    N = B * T

    params = init_params(jax.random.PRNGKey(0), in_channels=CIN, hidden_dim=D,
                         num_classes=NUM_CLASSES)

    kf, kh, kb, kr = jax.random.split(jax.random.PRNGKey(0), 4)
    feat = jax.random.normal(kf, (N, CIN, H, W), jnp.float32)        # backbone feature (NCHW)
    hs = jax.random.normal(kh, (L, B, T * Q, D), jnp.float32)        # decoder class stream
    hs_box = jax.random.normal(kb, (L, B, T * Q, D), jnp.float32)    # decoder box stream
    refs = jax.nn.sigmoid(jax.random.normal(kr, (L, B, T * Q, 2), jnp.float32))

    # small head tile so the demo actually exercises the row-tiled grid (3 steps)
    fwd = jax.jit(functools.partial(
        deformable_detr_forward, num_frames=T, num_queries=Q, aux_loss=True,
        head_tile_rows=32))
    outputs, src_proj = fwd(feat, hs, hs_box, refs, params)
    jax.block_until_ready((outputs["pred_logits"], outputs["pred_boxes"], src_proj))

    ref_logits, ref_coords, ref_src = _reference_forward(
        feat, hs, hs_box, refs, params, num_frames=T, num_queries=Q)

    checks = [
        ("pred_logits", outputs["pred_logits"],
         ref_logits.reshape(L, B, T, Q, NUM_CLASSES)[-1]),
        ("pred_boxes", outputs["pred_boxes"], ref_coords[-1]),
        ("src_proj", src_proj.astype(jnp.float32), ref_src),
    ]

    # also exercise the two-pass fallback with a ragged (non-divisible) HW tile
    two_pass = jax.jit(functools.partial(input_proj, num_groups=32, eps=1e-5,
                                         tile_hw=96, force_two_pass=True))(
        feat, params["proj_w"], params["proj_b"],
        params["gn_gamma"], params["gn_beta"])
    jax.block_until_ready(two_pass)
    checks.append(("src_proj_two_pass",
                   two_pass.reshape(N // T, T, H, W, -1).astype(jnp.float32), ref_src))

    for name, got, want in checks:
        diff = float(jnp.max(jnp.abs(got - want)))
        if diff > 5e-2:
            raise SystemExit(f"FAIL: {name} max abs diff {diff}")
    print("KERNEL_OK")
</pallas_src>

<mosaic_0001>
module attributes {stable_mosaic.version = 11 : i64} {
  func.func @_head_kernel(%arg0: i32, %arg1: memref<32x64xbf16, #tpu.memory_space<vmem>>, %arg2: memref<32x64xbf16, #tpu.memory_space<vmem>>, %arg3: memref<64x128xbf16, #tpu.memory_space<vmem>>, %arg4: memref<1x128xf32, #tpu.memory_space<vmem>>, %arg5: memref<64x64xbf16, #tpu.memory_space<vmem>>, %arg6: memref<1x64xf32, #tpu.memory_space<vmem>>, %arg7: memref<64x64xbf16, #tpu.memory_space<vmem>>, %arg8: memref<1x64xf32, #tpu.memory_space<vmem>>, %arg9: memref<64x128xbf16, #tpu.memory_space<vmem>>, %arg10: memref<1x128xf32, #tpu.memory_space<vmem>>, %arg11: memref<32x128xf32, #tpu.memory_space<vmem>>, %arg12: memref<32x128xf32, #tpu.memory_space<vmem>>) attributes {dimension_semantics = [#tpu.dimension_semantics<parallel>], iteration_bounds = array<i64: 3>, scalar_prefetch = 0 : i64, scratch_operands = 0 : i64, tpu.core_type = #tpu.core_type<tc>, window_params = [{transform_indices = @transform_0, window_bounds = array<i64: 32, 64>}, {transform_indices = @transform_1, window_bounds = array<i64: 32, 64>}, {pipeline_mode = #tpu.pipeline_mode<synchronous>, transform_indices = @transform_2, window_bounds = array<i64: 64, 128>}, {pipeline_mode = #tpu.pipeline_mode<synchronous>, transform_indices = @transform_3, window_bounds = array<i64: 1, 128>}, {pipeline_mode = #tpu.pipeline_mode<synchronous>, transform_indices = @transform_4, window_bounds = array<i64: 64, 64>}, {pipeline_mode = #tpu.pipeline_mode<synchronous>, transform_indices = @transform_5, window_bounds = array<i64: 1, 64>}, {pipeline_mode = #tpu.pipeline_mode<synchronous>, transform_indices = @transform_6, window_bounds = array<i64: 64, 64>}, {pipeline_mode = #tpu.pipeline_mode<synchronous>, transform_indices = @transform_7, window_bounds = array<i64: 1, 64>}, {pipeline_mode = #tpu.pipeline_mode<synchronous>, transform_indices = @transform_8, window_bounds = array<i64: 64, 128>}, {pipeline_mode = #tpu.pipeline_mode<synchronous>, transform_indices = @transform_9, window_bounds = array<i64: 1, 128>}, {transform_indices = @transform_10, window_bounds = array<i64: 32, 128>}, {transform_indices = @transform_11, window_bounds = array<i64: 32, 128>}]} {
    %c0 = arith.constant 0 : index
    %c0_0 = arith.constant 0 : index
    %0 = vector.load %arg1[%c0, %c0_0] : memref<32x64xbf16, #tpu.memory_space<vmem>>, vector<32x64xbf16>
    %c0_1 = arith.constant 0 : index
    %c0_2 = arith.constant 0 : index
    %1 = vector.load %arg2[%c0_1, %c0_2] : memref<32x64xbf16, #tpu.memory_space<vmem>>, vector<32x64xbf16>
    %c0_3 = arith.constant 0 : index
    %c0_4 = arith.constant 0 : index
    %2 = vector.load %arg3[%c0_3, %c0_4] : memref<64x128xbf16, #tpu.memory_space<vmem>>, vector<64x128xbf16>
    %cst = arith.constant dense<0.000000e+00> : vector<32x128xf32>
    %3 = tpu.matmul %0, %2, %cst {dimension_numbers = #tpu.dot_dimension_numbers<[1], [0], [0], [1], [0, 0, 1, 1], [], []>} : vector<32x64xbf16>, vector<64x128xbf16>, vector<32x128xf32> -> vector<32x128xf32>
    %c0_5 = arith.constant 0 : index
    %c0_6 = arith.constant 0 : index
    %4 = vector.load %arg4[%c0_5, %c0_6] : memref<1x128xf32, #tpu.memory_space<vmem>>, vector<1x128xf32>
    %5 = vector.broadcast %4 : vector<1x128xf32> to vector<32x128xf32>
    %6 = arith.addf %3, %5 : vector<32x128xf32>
    %c0_7 = arith.constant 0 : index
    %c0_8 = arith.constant 0 : index
    %7 = vector.load %arg11[%c0_7, %c0_8] : memref<32x128xf32, #tpu.memory_space<vmem>>, vector<32x128xf32>
    tpu.vector_store %arg11[%c0_7, %c0_8], %6 {strides = array<i32>} : memref<32x128xf32, #tpu.memory_space<vmem>>, vector<32x128xf32>,
    %c0_9 = arith.constant 0 : index
    %c0_10 = arith.constant 0 : index
    %8 = vector.load %arg5[%c0_9, %c0_10] : memref<64x64xbf16, #tpu.memory_space<vmem>>, vector<64x64xbf16>
    %cst_11 = arith.constant dense<0.000000e+00> : vector<32x64xf32>
    %9 = tpu.matmul %1, %8, %cst_11 {dimension_numbers = #tpu.dot_dimension_numbers<[1], [0], [0], [1], [0, 0, 1, 1], [], []>} : vector<32x64xbf16>, vector<64x64xbf16>, vector<32x64xf32> -> vector<32x64xf32>
    %c0_12 = arith.constant 0 : index
    %c0_13 = arith.constant 0 : index
    %10 = vector.load %arg6[%c0_12, %c0_13] : memref<1x64xf32, #tpu.memory_space<vmem>>, vector<1x64xf32>
    %11 = vector.broadcast %10 : vector<1x64xf32> to vector<32x64xf32>
    %12 = arith.addf %9, %11 : vector<32x64xf32>
    %cst_14 = arith.constant 0.000000e+00 : f32
    %13 = vector.broadcast %cst_14 : f32 to vector<32x64xf32>
    %14 = arith.maximumf %12, %13 : vector<32x64xf32>
    %15 = arith.truncf %14 : vector<32x64xf32> to vector<32x64xbf16>
    %c0_15 = arith.constant 0 : index
    %c0_16 = arith.constant 0 : index
    %16 = vector.load %arg7[%c0_15, %c0_16] : memref<64x64xbf16, #tpu.memory_space<vmem>>, vector<64x64xbf16>
    %cst_17 = arith.constant dense<0.000000e+00> : vector<32x64xf32>
    %17 = tpu.matmul %15, %16, %cst_17 {dimension_numbers = #tpu.dot_dimension_numbers<[1], [0], [0], [1], [0, 0, 1, 1], [], []>} : vector<32x64xbf16>, vector<64x64xbf16>, vector<32x64xf32> -> vector<32x64xf32>
    %c0_18 = arith.constant 0 : index
    %c0_19 = arith.constant 0 : index
    %18 = vector.load %arg8[%c0_18, %c0_19] : memref<1x64xf32, #tpu.memory_space<vmem>>, vector<1x64xf32>
    %19 = vector.broadcast %18 : vector<1x64xf32> to vector<32x64xf32>
    %20 = arith.addf %17, %19 : vector<32x64xf32>
    %cst_20 = arith.constant 0.000000e+00 : f32
    %21 = vector.broadcast %cst_20 : f32 to vector<32x64xf32>
    %22 = arith.maximumf %20, %21 : vector<32x64xf32>
    %23 = arith.truncf %22 : vector<32x64xf32> to vector<32x64xbf16>
    %c0_21 = arith.constant 0 : index
    %c0_22 = arith.constant 0 : index
    %24 = vector.load %arg9[%c0_21, %c0_22] : memref<64x128xbf16, #tpu.memory_space<vmem>>, vector<64x128xbf16>
    %cst_23 = arith.constant dense<0.000000e+00> : vector<32x128xf32>
    %25 = tpu.matmul %23, %24, %cst_23 {dimension_numbers = #tpu.dot_dimension_numbers<[1], [0], [0], [1], [0, 0, 1, 1], [], []>} : vector<32x64xbf16>, vector<64x128xbf16>, vector<32x128xf32> -> vector<32x128xf32>
    %c0_24 = arith.constant 0 : index
    %c0_25 = arith.constant 0 : index
    %26 = vector.load %arg10[%c0_24, %c0_25] : memref<1x128xf32, #tpu.memory_space<vmem>>, vector<1x128xf32>
    %27 = vector.broadcast %26 : vector<1x128xf32> to vector<32x128xf32>
    %28 = arith.addf %25, %27 : vector<32x128xf32>
    %c0_26 = arith.constant 0 : index
    %c0_27 = arith.constant 0 : index
    %29 = vector.load %arg12[%c0_26, %c0_27] : memref<32x128xf32, #tpu.memory_space<vmem>>, vector<32x128xf32>
    tpu.vector_store %arg12[%c0_26, %c0_27], %28 {strides = array<i32>} : memref<32x128xf32, #tpu.memory_space<vmem>>, vector<32x128xf32>,
    return
  }
  func.func @transform_0(%arg0: i32) -> (i32, i32) {
    %c0_i32 = arith.constant 0 : i32
    %c0_i32_0 = arith.constant 0 : i32
    return %arg0, %c0_i32 : i32, i32
  }
  func.func @transform_1(%arg0: i32) -> (i32, i32) {
    %c0_i32 = arith.constant 0 : i32
    %c0_i32_0 = arith.constant 0 : i32
    return %arg0, %c0_i32 : i32, i32
  }
  func.func @transform_2(%arg0: i32) -> (i32, i32) {
    %c0_i32 = arith.constant 0 : i32
    %c0_i32_0 = arith.constant 0 : i32
    %c0_i32_1 = arith.constant 0 : i32
    return %c0_i32, %c0_i32_0 : i32, i32
  }
  func.func @transform_3(%arg0: i32) -> (i32, i32) {
    %c0_i32 = arith.constant 0 : i32
    %c0_i32_0 = arith.constant 0 : i32
    %c0_i32_1 = arith.constant 0 : i32
    return %c0_i32, %c0_i32_0 : i32, i32
  }
  func.func @transform_4(%arg0: i32) -> (i32, i32) {
    %c0_i32 = arith.constant 0 : i32
    %c0_i32_0 = arith.constant 0 : i32
    %c0_i32_1 = arith.constant 0 : i32
    return %c0_i32, %c0_i32_0 : i32, i32
  }
  func.func @transform_5(%arg0: i32) -> (i32, i32) {
    %c0_i32 = arith.constant 0 : i32
    %c0_i32_0 = arith.constant 0 : i32
    %c0_i32_1 = arith.constant 0 : i32
    return %c0_i32, %c0_i32_0 : i32, i32
  }
  func.func @transform_6(%arg0: i32) -> (i32, i32) {
    %c0_i32 = arith.constant 0 : i32
    %c0_i32_0 = arith.constant 0 : i32
    %c0_i32_1 = arith.constant 0 : i32
    return %c0_i32, %c0_i32_0 : i32, i32
  }
  func.func @transform_7(%arg0: i32) -> (i32, i32) {
    %c0_i32 = arith.constant 0 : i32
    %c0_i32_0 = arith.constant 0 : i32
    %c0_i32_1 = arith.constant 0 : i32
    return %c0_i32, %c0_i32_0 : i32, i32
  }
  func.func @transform_8(%arg0: i32) -> (i32, i32) {
    %c0_i32 = arith.constant 0 : i32
    %c0_i32_0 = arith.constant 0 : i32
    %c0_i32_1 = arith.constant 0 : i32
    return %c0_i32, %c0_i32_0 : i32, i32
  }
  func.func @transform_9(%arg0: i32) -> (i32, i32) {
    %c0_i32 = arith.constant 0 : i32
    %c0_i32_0 = arith.constant 0 : i32
    %c0_i32_1 = arith.constant 0 : i32
    return %c0_i32, %c0_i32_0 : i32, i32
  }
  func.func @transform_10(%arg0: i32) -> (i32, i32) {
    %c0_i32 = arith.constant 0 : i32
    %c0_i32_0 = arith.constant 0 : i32
    return %arg0, %c0_i32 : i32, i32
  }
  func.func @transform_11(%arg0: i32) -> (i32, i32) {
    %c0_i32 = arith.constant 0 : i32
    %c0_i32_0 = arith.constant 0 : i32
    return %arg0, %c0_i32 : i32, i32
  }
}

module attributes {stable_mosaic.version = 11 : i64} {
  func.func @kernel(%arg0: i32, %arg1: memref<1x256x4xbf16, #tpu.memory_space<vmem>>, %arg2: memref<4x64xbf16, #tpu.memory_space<vmem>>, %arg3: memref<1x64xf32, #tpu.memory_space<vmem>>, %arg4: memref<64x64xf32, #tpu.memory_space<vmem>>, %arg5: memref<1x64xf32, #tpu.memory_space<vmem>>, %arg6: memref<1x64xf32, #tpu.memory_space<vmem>>, %arg7: memref<1x256x64xbf16, #tpu.memory_space<vmem>>) attributes {dimension_semantics = [#tpu.dimension_semantics<parallel>], iteration_bounds = array<i64: 4>, scalar_prefetch = 0 : i64, scratch_operands = 0 : i64, tpu.core_type = #tpu.core_type<tc>, window_params = [{transform_indices = @transform_0, window_bounds = array<i64: 1, 256, 4>}, {pipeline_mode = #tpu.pipeline_mode<synchronous>, transform_indices = @transform_1, window_bounds = array<i64: 4, 64>}, {pipeline_mode = #tpu.pipeline_mode<synchronous>, transform_indices = @transform_2, window_bounds = array<i64: 1, 64>}, {pipeline_mode = #tpu.pipeline_mode<synchronous>, transform_indices = @transform_3, window_bounds = array<i64: 64, 64>}, {pipeline_mode = #tpu.pipeline_mode<synchronous>, transform_indices = @transform_4, window_bounds = array<i64: 1, 64>}, {pipeline_mode = #tpu.pipeline_mode<synchronous>, transform_indices = @transform_5, window_bounds = array<i64: 1, 64>}, {transform_indices = @transform_6, window_bounds = array<i64: 1, 256, 64>}]} {
    %c0 = arith.constant 0 : index
    %c0_0 = arith.constant 0 : index
    %c0_1 = arith.constant 0 : index
    %0 = vector.load %arg1[%c0, %c0_0, %c0_1] : memref<1x256x4xbf16, #tpu.memory_space<vmem>>, vector<1x256x4xbf16>
    %1 = vector.shape_cast %0 : vector<1x256x4xbf16> to vector<256x4xbf16>
    %c0_2 = arith.constant 0 : index
    %c0_3 = arith.constant 0 : index
    %2 = vector.load %arg2[%c0_2, %c0_3] : memref<4x64xbf16, #tpu.memory_space<vmem>>, vector<4x64xbf16>
    %cst = arith.constant dense<0.000000e+00> : vector<256x64xf32>
    %3 = tpu.matmul %1, %2, %cst {dimension_numbers = #tpu.dot_dimension_numbers<[1], [0], [0], [1], [0, 0, 1, 1], [], []>} : vector<256x4xbf16>, vector<4x64xbf16>, vector<256x64xf32> -> vector<256x64xf32>
    %c0_4 = arith.constant 0 : index
    %c0_5 = arith.constant 0 : index
    %4 = vector.load %arg3[%c0_4, %c0_5] : memref<1x64xf32, #tpu.memory_space<vmem>>, vector<1x64xf32>
    %5 = vector.broadcast %4 : vector<1x64xf32> to vector<256x64xf32>
    %6 = arith.addf %3, %5 : vector<256x64xf32>
    %cst_6 = arith.constant dense<0.000000e+00> : vector<64xf32>
    %7 = vector.multi_reduction <add>, %6, %cst_6 [0] : vector<256x64xf32> to vector<64xf32>
    %8 = vector.shape_cast %7 : vector<64xf32> to vector<1x64xf32>
    %c0_7 = arith.constant 0 : index
    %c0_8 = arith.constant 0 : index
    %9 = vector.load %arg4[%c0_7, %c0_8] : memref<64x64xf32, #tpu.memory_space<vmem>>, vector<64x64xf32>
    %cst_9 = arith.constant dense<0.000000e+00> : vector<1x64xf32>
    %10 = tpu.matmul %8, %9, %cst_9 {dimension_numbers = #tpu.dot_dimension_numbers<[1], [0], [0], [1], [0, 0, 1, 1], [], []>} : vector<1x64xf32>, vector<64x64xf32>, vector<1x64xf32> -> vector<1x64xf32>
    %11 = vector.broadcast %10 : vector<1x64xf32> to vector<256x64xf32>
    %12 = arith.subf %6, %11 : vector<256x64xf32>
    %13 = arith.mulf %12, %12 : vector<256x64xf32>
    %cst_10 = arith.constant dense<0.000000e+00> : vector<64xf32>
    %14 = vector.multi_reduction <add>, %13, %cst_10 [0] : vector<256x64xf32> to vector<64xf32>
    %15 = vector.shape_cast %14 : vector<64xf32> to vector<1x64xf32>
    %c0_11 = arith.constant 0 : index
    %c0_12 = arith.constant 0 : index
    %16 = vector.load %arg4[%c0_11, %c0_12] : memref<64x64xf32, #tpu.memory_space<vmem>>, vector<64x64xf32>
    %cst_13 = arith.constant dense<0.000000e+00> : vector<1x64xf32>
    %17 = tpu.matmul %15, %16, %cst_13 {dimension_numbers = #tpu.dot_dimension_numbers<[1], [0], [0], [1], [0, 0, 1, 1], [], []>} : vector<1x64xf32>, vector<64x64xf32>, vector<1x64xf32> -> vector<1x64xf32>
    %cst_14 = arith.constant 9.99999974E-6 : f32
    %18 = vector.broadcast %cst_14 : f32 to vector<1x64xf32>
    %19 = arith.addf %17, %18 : vector<1x64xf32>
    %20 = math.rsqrt %19 : vector<1x64xf32>
    %21 = vector.broadcast %20 : vector<1x64xf32> to vector<256x64xf32>
    %22 = arith.mulf %12, %21 : vector<256x64xf32>
    %c0_15 = arith.constant 0 : index
    %c0_16 = arith.constant 0 : index
    %23 = vector.load %arg5[%c0_15, %c0_16] : memref<1x64xf32, #tpu.memory_space<vmem>>, vector<1x64xf32>
    %24 = vector.broadcast %23 : vector<1x64xf32> to vector<256x64xf32>
    %25 = arith.mulf %22, %24 : vector<256x64xf32>
    %c0_17 = arith.constant 0 : index
    %c0_18 = arith.constant 0 : index
    %26 = vector.load %arg6[%c0_17, %c0_18] : memref<1x64xf32, #tpu.memory_space<vmem>>, vector<1x64xf32>
    %27 = vector.broadcast %26 : vector<1x64xf32> to vector<256x64xf32>
    %28 = arith.addf %25, %27 : vector<256x64xf32>
    %29 = arith.truncf %28 : vector<256x64xf32> to vector<256x64xbf16>
    %c0_19 = arith.constant 0 : index
    %c0_20 = arith.constant 0 : index
    %c0_21 = arith.constant 0 : index
    %30 = vector.load %arg7[%c0_19, %c0_20, %c0_21] : memref<1x256x64xbf16, #tpu.memory_space<vmem>>, vector<1x256x64xbf16>
    %31 = vector.shape_cast %30 : vector<1x256x64xbf16> to vector<256x64xbf16>
    %32 = vector.shape_cast %29 : vector<256x64xbf16> to vector<1x256x64xbf16>
    tpu.vector_store %arg7[%c0_19, %c0_20, %c0_21], %32 {strides = array<i32>} : memref<1x256x64xbf16, #tpu.memory_space<vmem>>, vector<1x256x64xbf16>,
    return
  }
  func.func @transform_0(%arg0: i32) -> (i32, i32, i32) {
    %c0_i32 = arith.constant 0 : i32
    %c0_i32_0 = arith.constant 0 : i32
    %c0_i32_1 = arith.constant 0 : i32
    return %arg0, %c0_i32, %c0_i32_0 : i32, i32, i32
  }
  func.func @transform_1(%arg0: i32) -> (i32, i32) {
    %c0_i32 = arith.constant 0 : i32
    %c0_i32_0 = arith.constant 0 : i32
    %c0_i32_1 = arith.constant 0 : i32
    return %c0_i32, %c0_i32_0 : i32, i32
  }
  func.func @transform_2(%arg0: i32) -> (i32, i32) {
    %c0_i32 = arith.constant 0 : i32
    %c0_i32_0 = arith.constant 0 : i32
    %c0_i32_1 = arith.constant 0 : i32
    return %c0_i32, %c0_i32_0 : i32, i32
  }
  func.func @transform_3(%arg0: i32) -> (i32, i32) {
    %c0_i32 = arith.constant 0 : i32
    %c0_i32_0 = arith.constant 0 : i32
    %c0_i32_1 = arith.constant 0 : i32
    return %c0_i32, %c0_i32_0 : i32, i32
  }
  func.func @transform_4(%arg0: i32) -> (i32, i32) {
    %c0_i32 = arith.constant 0 : i32
    %c0_i32_0 = arith.constant 0 : i32
    %c0_i32_1 = arith.constant 0 : i32
    return %c0_i32, %c0_i32_0 : i32, i32
  }
  func.func @transform_5(%arg0: i32) -> (i32, i32) {
    %c0_i32 = arith.constant 0 : i32
    %c0_i32_0 = arith.constant 0 : i32
    %c0_i32_1 = arith.constant 0 : i32
    return %c0_i32, %c0_i32_0 : i32, i32
  }
  func.func @transform_6(%arg0: i32) -> (i32, i32, i32) {
    %c0_i32 = arith.constant 0 : i32
    %c0_i32_0 = arith.constant 0 : i32
    %c0_i32_1 = arith.constant 0 : i32
    return %arg0, %c0_i32, %c0_i32_0 : i32, i32, i32
  }
}

</mosaic_0001>

<bundles_post_ra>
// kernel: deformable_detr_forward.3
= control target key start
LH: loop header
LB: loop body
LE: loop exit
PB: predicated region body
PF: predicated region fallthrough
CT: control target
= control target key end

     0   :  { %s1025_s17 = smov 0   ;;  %s1124_s0 = inlined_call_operand.vmem [shape: bf16[96,64], index: 0, kind: input, shape index: {}]   ;;  %s1125_s1 = inlined_call_operand.vmem [shape: bf16[96,64], index: 1, kind: input, shape index: {}]   ;;  %s1126_s2 = inlined_call_operand.vmem [shape: bf16[64,128], index: 2, kind: input, shape index: {}]   ;;  %s1127_s3 = inlined_call_operand.vmem [shape: f32[1,128], index: 3, kind: input, shape index: {}]   ;;  %s1128_s4 = inlined_call_operand.vmem [shape: bf16[64,64], index: 4, kind: input, shape index: {}]   ;;  %s1129_s5 = inlined_call_operand.vmem [shape: f32[1,64], index: 5, kind: input, shape index: {}]   ;;  %s1130_s6 = inlined_call_operand.vmem [shape: bf16[64,64], index: 6, kind: input, shape index: {}]   ;;  %s1131_s7 = inlined_call_operand.vmem [shape: f32[1,64], index: 7, kind: input, shape index: {}]   ;;  %s1132_s8 = inlined_call_operand.vmem [shape: bf16[64,128], index: 8, kind: input, shape index: {}]   ;;  %s1133_s9 = inlined_call_operand.vmem [shape: f32[1,128], index: 9, kind: input, shape index: {}]   ;;  %s1134_s10 = inlined_call_operand.vmem [shape: f32[96,128], index: 10, kind: output, shape index: {0}]   ;;  %s1135_s11 = inlined_call_operand.vmem [shape: f32[96,128], index: 11, kind: output, shape index: {1}]  }
   0x1 LB: > { %s822_s18 = sadd.s32 4294967295, %s963_s17   ;;  %p826_p0 = scmp.ge.s32.totalorder %s963_s17, 1  ;;  %s963_s17 = sphi %s1025_s17, %s22_s17  }
   0x2   : > { %p352_p1 = scmp.lt.s32.totalorder %s963_s17, 4 }
   0x4   : > { %p353_p2 = pnand %p826_p0, %p352_p1 }
   0x5   : > { %s827_s21 = sshll.u32 (!%p353_p2), %s822_s18, 2 }
   0x6   : > { %356 = sbr.rel (%p353_p2) target bundleno = 472 (0x1d8), region = 60  ;;  %p403_p3 = scmp.lt.s32.totalorder (!%p353_p2), %s827_s21, 11 }
   0xb   : > { %v936_v0 = vld [vmem:[%s1128_s4 + $0x18] sm:$0xff]  ;;  %v935_v1 = vld [vmem:[%s1128_s4 + $0x10] sm:$0xff]  ;;  %s1137_s21 = smov (!%p403_p3, %s827_s21), 11  ;;  %v934_v2 = vld [vmem:[%s1128_s4 + $0x8] sm:$0xff]  ;;  %vm481_vm0 = vcmask 523264  }
   0xc   : > { %567 = vmatpush.bf16.msra.mxu1 %v936_v0  ;;  %s828_s26 = sshll.u32 %s1137_s21, 2  ;;  %v933_v3 = vld [vmem:[%s1128_s4] sm:$0xff]  ;;  %v940_v6 = vld [vmem:[%s1130_s6 + $0x18] sm:$0xff]  ;;  %v939_v7 = vld [vmem:[%s1130_s6 + $0x10] sm:$0xff] }
   0xd   : > { %s412_s12 = scalar_lea.vmem %s1125_s1, %s828_s26  ;;  %634 = vmatpush.bf16.msra.mxu2 %v940_v6  ;;  %v938_v8 = vld [vmem:[%s1130_s6 + $0x8] sm:$0xff]  ;;  %v937_v9 = vld [vmem:[%s1130_s6] sm:$0xff]  ;;  %v932_v10 = vld [vmem:[%s1126_s2 + $0x18] sm:$0xff]  ;;  %s406_s25 = scalar_lea.vmem %s1124_s0, %s828_s26 }
   0xe   : > { %v927_v4 = vld [vmem:[%s412_s12] sm:$0xff]  ;;  %v928_v5 = vld [vmem:[%s412_s12 + $0x8] sm:$0xff]  ;;  %492 = vmatpush.bf16.msra.mxu0 %v932_v10  ;;  %v944_v26 = vld [vmem:[%s1132_s8 + $0x18] sm:$0xff]  ;;  %s832_s26 = sshll.u32 %s1137_s21, 3 }
   0xf   : > { %v953_v12 = vld [vmem:[%s1129_s5] ss:$0 sm:$0xff]  ;;  %701 = vmatpush.bf16.msra.mxu3 %v944_v26  ;;  %v931_v27 = vld [vmem:[%s1126_s2 + $0x10] sm:$0xff]  ;;  %v930_v29 = vld [vmem:[%s1126_s2 + $0x8] sm:$0xff]  ;;  %s418_s16 = scalar_lea.vmem %s1134_s10, %s832_s26  ;;  %s424_s22 = scalar_lea.vmem %s1135_s11, %s832_s26 }
  0x10   : > { %568 = vmatpush.bf16.msra.mxu1 %v935_v1  ;;  %v943_v28 = vld [vmem:[%s1132_s8 + $0x10] sm:$0xff]  ;;  %v942_v30 = vld [vmem:[%s1132_s8 + $0x8] sm:$0xff]  ;;  %v929_v31 = vld [vmem:[%s1126_s2] sm:$0xff] }
  0x11   : > { %635 = vmatpush.bf16.msra.mxu2 %v939_v7  ;;  %v941_v32 = vld [vmem:[%s1132_s8] sm:$0xff]  ;;  %v926_v34 = vld [vmem:[%s406_s25 + $0x8] sm:$0xff] }
  0x12   : > { %493 = vmatpush.bf16.msra.mxu0 %v931_v27  ;;  %v925_v33 = vld [vmem:[%s406_s25] sm:$0xff] }
  0x13   : > { %702 = vmatpush.bf16.msra.mxu3 %v943_v28  ;;  %v954_v36 = vld [vmem:[%s1131_s7] ss:$0 sm:$0xff] }
  0x14   : > { %569 = vmatpush.bf16.msra.mxu1 %v934_v2  ;;  %v955_v50 = vld [vmem:[%s1127_s3] ss:$0 sm:$0xff] }
  0x15   : > { %636 = vmatpush.bf16.msra.mxu2 %v938_v8  ;;  %v956_v59 = vld [vmem:[%s1133_s9] ss:$0 sm:$0xff] }
  0x16   : > { %494 = vmatpush.bf16.msra.mxu0 %v930_v29 }
  0x17   : > { %703 = vmatpush.bf16.msra.mxu3 %v942_v30 }
  0x18   : > { %570 = vmatpush.bf16.msra.mxu1 %v933_v3 }
  0x19   : > { %637 = vmatpush.bf16.msra.mxu2 %v937_v9 }
  0x1a   : > { %495 = vmatpush.bf16.msra.mxu0 %v929_v31 }
  0x1b   : > { %885 = vmatmul.msk.bf16.vlgmr.msra.gmra.mxu1 %vm481_vm0, %v927_v4  ;;  %704 = vmatpush.bf16.msra.mxu3 %v941_v32 }
  0x1d   : > { %859 = vmatmul.msk.bf16.vlgmr.msra.gmra.mxu0 %vm481_vm0, %v925_v33 }
  0x2b   : > { %886 = vmatmul.msk.bf16.gmra.mxu1 %vm481_vm0, %v928_v5 }
  0x2d   : > { %860 = vmatmul.msk.bf16.gmra.mxu0 %vm481_vm0, %v926_v34 }
  0x98   : > { %v572_v11 = vpop.f32.mrf.mxu1 }
  0x99   : > { %v573_v13 = vadd.f32 %v953_v12, %v572_v11 }
  0x9a   : > { %v497_v51 = vpop.f32.mrf.mxu0 }
  0x9b   : > { %v582_v16 = vmax.f32 %v573_v13, 0.0  ;;  %v498_v52 = vadd.f32 %v955_v50, %v497_v51 }
  0x9d   : > { %507 = vst [vmem:[%s418_s16] sm:$0xff] %v498_v52 }
  0xa0   : > { %v574_v14 = vpop.f32.mrf.mxu1 }
  0xa1   : > { %v575_v15 = vadd.f32 %v953_v12, %v574_v14 }
  0xa2   : > { %v499_v53 = vpop.f32.mrf.mxu0 }
  0xa3   : > { %v583_v17 = vmax.f32 %v575_v15, 0.0  ;;  %v500_v54 = vadd.f32 %v955_v50, %v499_v53 }
  0xa5   : > { %v586_v18 = vpack.c.bf16 %v583_v17, %v582_v16  ;;  %508 = vst [vmem:[%s418_s16 + $0x8] sm:$0xff] %v500_v54 }
  0xa7   : > { %903 = vmatmul.msk.bf16.vlgmr.msra.gmra.mxu2 %vm481_vm0, %v586_v18 }
  0xa8   : > { %v577_v19 = vpop.f32.mrf.mxu1 }
  0xa9   : > { %v578_v20 = vadd.f32 %v953_v12, %v577_v19 }
  0xaa   : > { %v502_v55 = vpop.f32.mrf.mxu0 }
  0xab   : > { %v584_v23 = vmax.f32 %v578_v20, 0.0  ;;  %v503_v56 = vadd.f32 %v955_v50, %v502_v55 }
  0xad   : > { %509 = vst [vmem:[%s418_s16 + $0x10] sm:$0xff] %v503_v56 }
  0xb0   : > { %v579_v21 = vpop.f32.mrf.mxu1 }
  0xb1   : > { %v580_v22 = vadd.f32 %v953_v12, %v579_v21 }
  0xb2   : > { %v504_v57 = vpop.f32.mrf.mxu0 }
  0xb3   : > { %v585_v24 = vmax.f32 %v580_v22, 0.0  ;;  %v505_v58 = vadd.f32 %v955_v50, %v504_v57 }
  0xb5   : > { %v587_v25 = vpack.c.bf16 %v585_v24, %v584_v23  ;;  %510 = vst [vmem:[%s418_s16 + $0x18] sm:$0xff] %v505_v58 }
  0xb7   : > { %904 = vmatmul.msk.bf16.gmra.mxu2 %vm481_vm0, %v587_v25 }
 0x12a   : > { %v639_v35 = vpop.f32.mrf.mxu2 }
 0x12b   : > { %v640_v37 = vadd.f32 %v954_v36, %v639_v35 }
 0x12d   : > { %v649_v40 = vmax.f32 %v640_v37, 0.0 }
 0x132   : > { %v641_v38 = vpop.f32.mrf.mxu2 }
 0x133   : > { %v642_v39 = vadd.f32 %v954_v36, %v641_v38 }
 0x135   : > { %v650_v41 = vmax.f32 %v642_v39, 0.0 }
 0x137   : > { %v653_v42 = vpack.c.bf16 %v650_v41, %v649_v40 }
 0x139   : > { %921 = vmatmul.msk.bf16.vlgmr.msra.gmra.mxu3 %vm481_vm0, %v653_v42 }
 0x13a   : > { %v644_v43 = vpop.f32.mrf.mxu2 }
 0x13b   : > { %v645_v44 = vadd.f32 %v954_v36, %v644_v43 }
 0x13d   : > { %v651_v47 = vmax.f32 %v645_v44, 0.0 }
 0x142   : > { %v646_v45 = vpop.f32.mrf.mxu2 }
 0x143   : > { %v647_v46 = vadd.f32 %v954_v36, %v646_v45 }
 0x145   : > { %v652_v48 = vmax.f32 %v647_v46, 0.0 }
 0x147   : > { %v654_v49 = vpack.c.bf16 %v652_v48, %v651_v47 }
 0x149   : > { %922 = vmatmul.msk.bf16.gmra.mxu3 %vm481_vm0, %v654_v49 }
 0x1bc   : > { %v706_v60 = vpop.f32.mrf.mxu3 }
 0x1bd   : > { %v707_v61 = vadd.f32 %v956_v59, %v706_v60 }
 0x1bf   : > { %716 = vst [vmem:[%s424_s22] sm:$0xff] %v707_v61 }
 0x1c4   : > { %v708_v62 = vpop.f32.mrf.mxu3 }
 0x1c5   : > { %v709_v63 = vadd.f32 %v956_v59, %v708_v62 }
 0x1c7   : > { %717 = vst [vmem:[%s424_s22 + $0x8] sm:$0xff] %v709_v63 }
 0x1cc   : > { %v711_v0 = vpop.f32.mrf.mxu3 }
 0x1cd   : > { %v712_v1 = vadd.f32 %v956_v59, %v711_v0 }
 0x1cf   : > { %718 = vst [vmem:[%s424_s22 + $0x10] sm:$0xff] %v712_v1 }
 0x1d4   : > { %v713_v2 = vpop.f32.mrf.mxu3 }
 0x1d5   : > { %v714_v3 = vadd.f32 %v956_v59, %v713_v2 }
 0x1d7   : > { %719 = vst [vmem:[%s424_s22 + $0x18] sm:$0xff] %v714_v3 }
 0x1d8 PF: > { %s22_s17 = sadd.s32 1, %s963_s17  }
 0x1d9   : > { %p19_p4 = scmp.ge.s32.totalorder %s22_s17, 5  }
 0x1db   :  { %21 = sbr.rel (!%p19_p4) target bundleno = 1 (0x1), region = 105 }

// kernel: deformable_detr_forward.2
= control target key start
LH: loop header
LB: loop body
LE: loop exit
PB: predicated region body
PF: predicated region fallthrough
CT: control target
= control target key end

     0   :  { %11 = vsyncpa [#allocation3], 0  ;;  %s2056_s0 = inlined_call_operand.vmem [shape: bf16[4,256,4], index: 0, kind: input, shape index: {}]   ;;  %s2057_s1 = inlined_call_operand.vmem [shape: bf16[4,64], index: 1, kind: input, shape index: {}]   ;;  %s2058_s2 = inlined_call_operand.vmem [shape: f32[1,64], index: 2, kind: input, shape index: {}]   ;;  %s2059_s3 = inlined_call_operand.vmem [shape: f32[64,64], index: 3, kind: input, shape index: {}]   ;;  %s2060_s4 = inlined_call_operand.vmem [shape: f32[1,64], index: 4, kind: input, shape index: {}]   ;;  %s2061_s5 = inlined_call_operand.vmem [shape: f32[1,64], index: 5, kind: input, shape index: {}]   ;;  %s2062_s6 = inlined_call_operand.hbm [shape: bf16[4,256,64], index: 6, kind: output, shape index: {}]  }
   0x1   :  { %13 = vsyncpa [#allocation3 + $0x1], 0  ;;  %s1288_s21 = smov 0   ;;  %s1290_s22 = smov 0  }
   0x2   :  { %s1292_s23 = smov 0   ;;  %s1294_s24 = smov 0  }
   0x3 LB: > { %s1309_s25 = sadd.s32 4294967295, %s1249_s24   ;;  %s1026_s26 = sadd.s32 4294967294, %s1249_s24   ;;  %s1249_s24 = sphi %s1294_s24, %s2068_s24   ;;  %s1245_s23 = sphi %s1292_s23, %s2067_s23   ;;  %s1241_s22 = sphi %s1290_s22, %s2066_s22   ;;  %s1237_s21 = sphi %s1288_s21, %s2065_s21  }
   0x4   : > { %s1313_s27 = sadd.s32 1, %s1249_s24   ;;  %s157_s28 = sadd.s32 1, %s1245_s23 }
   0x5   : > { %s154_s29 = ssub.s32 %s1249_s24, %s1313_s27  ;;  %p167_p0 = scmp.ne.s32.totalorder %s1245_s23, %s1241_s22 }
   0x6   : > { %p155_p1 = scmp.eq.s32.totalorder %s154_s29, 0  ;;  %p168_p2 = scmp.eq.s32.totalorder %s1309_s25, 3 }
   0x7   : > { %p173_p3 = scmp.ne.s32.totalorder %s1241_s22, %s1237_s21  ;;  %p174_p4 = scmp.eq.s32.totalorder %s1026_s26, 3 }
   0x8   : > { %s1324_s30 = scalar_select %p155_p1, %s1245_s23, %s157_s28  }
   0x9   : > { %p1326_p5 = por %p168_p2, %p167_p0  ;;  %p1330_p6 = por %p174_p4, %p173_p3 }
   0xa   : > { %p1029_p7 = scmp.ge.s32.totalorder %s1249_s24, 1  ;;  %p215_p8 = scmp.lt.s32.totalorder %s1249_s24, 5 }
   0xc   : > { %p216_p9 = pnand %p1029_p7, %p215_p8 }
   0xd   : > { %p245_p10 = scmp.lt.s32.totalorder (!%p216_p9), %s1309_s25, 3  ;;  %s242_s29 = sand.u32 (!%p216_p9), 1, %s1241_s22  }
   0xe   : > { %219 = sbr.rel (%p216_p9) target bundleno = 689 (0x2b1), region = 44  ;;  %s1030_s9 = sshll.u32 (!%p216_p9), %s242_s29, 7 }
   0xf   : > { %s1884_s10 = scalar_lea.vmem (!%p216_p9), [#allocation2], %s1030_s9  ;;  %s949_s16 = scalar_lea.sflag (!%p216_p9), [#allocation3], %s242_s29 }
  0x10   : > { %s961_s14 = sshll.u32 (!%p216_p9), %s1884_s10, 4  ;;  %s1207_s26 = scalar_lea.hbm (!%p216_p9), %s2062_s6, 512  ;;  %s962_s14 = int_to_ptr.vmem [resolvable:$true] %s961_s14 }
  0x13   : > { %v283_v0 = vld [vmem:[%s2057_s1] sm:$0x3]  ;;  %vm417_vm0 = vcmask 1041408   ;;  %s246_s11 = scalar_select %p245_p10, %s1309_s25, 3  ;;  %vm368_vm1 = vcmask 31744   ;;  %v587_v28 = vld [vmem:[%s2059_s3 + $0x38] sm:$0xff] }
  0x14   : > { %v419_v1 = vsel %vm417_vm0, %v283_v0, 0  ;;  %v1390_v33 = vld [vmem:[%s2058_s2] ss:$0 sm:$0xff]  ;;  %vm510_vm2 = vcmask 523264   ;;  %v586_v42 = vld [vmem:[%s2059_s3 + $0x30] sm:$0xff]  ;;  %v585_v60 = vld [vmem:[%s2059_s3 + $0x28] sm:$0xff] }
  0x15   : > { %428 = vmatpush.bf16.msra.mxu0 %v419_v1  ;;  %1138 = vmatpush.bf16.msra.mxu1 %v419_v1  ;;  %s1120_s12 = sshll.u32 %s246_s11, 7  ;;  %vm915_vm6 = vcmask 519168   ;;  %s1137_s11 = sshll.u32 %s1309_s25, 7 }
  0x16   : > { %1140 = vmatpush.bf16.msra.mxu3 %v419_v1  ;;  %1139 = vmatpush.bf16.msra.mxu2 %v419_v1  ;;  %s1344_s15 = scalar_lea.vmem %s2056_s0, %s1120_s12  ;;  %s960_s13 = scalar_lea.hbm %s2062_s6, %s1137_s11 }
  0x17   : > { %v1121_v2 = vld [vmem:[%s1344_s15] sm:$0xff]  ;;  %v1126_v3 = vld [vmem:[%s1344_s15 + $0x28] sm:$0xff]  ;;  %v1132_v4 = vld [vmem:[%s1344_s15 + $0x58] sm:$0xff] }
  0x18   : > { %1097 = vmatmul.msk.bf16.vlgmr.msra.gmra.mxu0 %vm368_vm1, %v1121_v2  ;;  %1102 = vmatmul.msk.bf16.vlgmr.msra.gmra.mxu1 %vm368_vm1, %v1126_v3  ;;  %v1122_v5 = vld [vmem:[%s1344_s15 + $0x8] sm:$0xff]  ;;  %v1127_v6 = vld [vmem:[%s1344_s15 + $0x30] sm:$0xff]  ;;  %v1133_v7 = vld [vmem:[%s1344_s15 + $0x60] sm:$0xff] }
  0x19   : > { %1108 = vmatmul.msk.bf16.vlgmr.msra.gmra.mxu3 %vm368_vm1, %v1132_v4  ;;  %v1130_v8 = vld [vmem:[%s1344_s15 + $0x48] sm:$0xff]  ;;  %v1123_v9 = vld [vmem:[%s1344_s15 + $0x10] sm:$0xff]  ;;  %v1128_v10 = vld [vmem:[%s1344_s15 + $0x38] sm:$0xff]  ;;  %599 = vmatpush.msrb.mxu1 %v587_v28 }
  0x1a   : > { %1106 = vmatmul.msk.bf16.vlgmr.msra.gmra.mxu2 %vm368_vm1, %v1130_v8  ;;  %v1134_v11 = vld [vmem:[%s1344_s15 + $0x68] sm:$0xff]  ;;  %v1131_v12 = vld [vmem:[%s1344_s15 + $0x50] sm:$0xff]  ;;  %v1124_v13 = vld [vmem:[%s1344_s15 + $0x18] sm:$0xff] }
  0x1b   : > { %v1129_v14 = vld [vmem:[%s1344_s15 + $0x40] sm:$0xff]  ;;  %v1135_v15 = vld [vmem:[%s1344_s15 + $0x70] sm:$0xff]  ;;  %v1136_v17 = vld [vmem:[%s1344_s15 + $0x78] sm:$0xff]  ;;  %756 = vmatpush.msrb.mxu2 %v587_v28  ;;  %600 = vmatpush.msrb.mxu1 %v586_v42 }
  0x1c   : > { %v1125_v16 = vld [vmem:[%s1344_s15 + $0x20] sm:$0xff]  ;;  %s963_s15 = sshll.u32 %s960_s13, 4  ;;  %s964_s15 = int_to_ptr.hbm [resolvable:$true] %s963_s15 }
  0x1d   : > { %757 = vmatpush.msrb.mxu2 %v586_v42  ;;  %601 = vmatpush.msrb.mxu1 %v585_v60  ;;  %v583_v42 = vld [vmem:[%s2059_s3 + $0x18] sm:$0xff]  ;;  %s1201_s17 = sshra.s32 %s964_s15, 4  ;;  %s1202_s17 = int_to_ptr.hbm [resolvable:$true] %s1201_s17 }
  0x1e   : > { %s1203_s18 = scalar_lea.hbm %s1202_s17, 128  ;;  %p1208_p0 = scmp.lt.s32.totalorder %s1202_s17, %s2062_s6 }
  0x1f   : > { %758 = vmatpush.msrb.mxu2 %v585_v60  ;;  %p1204_p11 = scmp.ne.s32.totalorder %s1202_s17, %s1203_s18  ;;  %p1209_p1 = scmp.lt.s32.totalorder %s1207_s26, %s1203_s18 }
  0x21   : > { %p1205_p12 = pnand %p1204_p11, %p1326_p5  ;;  %p1210_p2 = por %p1209_p1, %p1208_p0 }
  0x23   : > { %p1206_p13 = pneg %p1205_p12 }
  0x25   : > { %p1211_p3 = pnand %p1210_p2, %p1206_p13 }
  0x28   : > { %1098 = vmatmul.msk.bf16.gmra.mxu0 %vm368_vm1, %v1122_v5  ;;  %1103 = vmatmul.msk.bf16.gmra.mxu1 %vm368_vm1, %v1127_v6 }
  0x29   : > { %1109 = vmatmul.msk.bf16.gmra.mxu3 %vm368_vm1, %v1133_v7 }
  0x2a   : > { %1107 = vmatmul.msk.bf16.gmra.mxu2 %vm368_vm1, %v1131_v12 }
  0x38   : > { %1099 = vmatmul.msk.bf16.gmra.mxu0 %vm368_vm1, %v1123_v9  ;;  %1104 = vmatmul.msk.bf16.gmra.mxu1 %vm368_vm1, %v1128_v10 }
  0x39   : > { %1110 = vmatmul.msk.bf16.gmra.mxu3 %vm368_vm1, %v1134_v11 }
  0x48   : > { %1100 = vmatmul.msk.bf16.gmra.mxu0 %vm368_vm1, %v1124_v13  ;;  %1105 = vmatmul.msk.bf16.gmra.mxu1 %vm368_vm1, %v1129_v14 }
  0x49   : > { %1111 = vmatmul.msk.bf16.gmra.mxu3 %vm368_vm1, %v1135_v15 }
  0x58   : > { %1101 = vmatmul.msk.bf16.gmra.mxu0 %vm368_vm1, %v1125_v16 }
  0x59   : > { %1112 = vmatmul.msk.bf16.gmra.mxu3 %vm368_vm1, %v1136_v17 }
  0x95   : > { %v430_v18 = vpop.f32.mrf.mxu0  ;;  %v455_v20 = vpop.f32.mrf.mxu1 }
  0x96   : > { %v1398_v37 = vadd.f32 %v1390_v33, %v430_v18  ;;  %v1450_v7 = vadd.f32 %v1390_v33, %v455_v20 }
  0x98   : > { %v511_v43 = vsel %vm510_vm2, %v1398_v37, 0.0  ;;  %v530_v14 = vsel %vm510_vm2, %v1450_v7, 0.0 }
  0x9c   : > { %v1378_v22 = vpop.f32.mrf.mxu3 }
  0x9d   : > { %v432_v19 = vpop.f32.mrf.mxu0  ;;  %v457_v24 = vpop.f32.mrf.mxu1 }
  0x9e   : > { %v1395_v35 = vadd.f32 %v1390_v33, %v432_v19  ;;  %v475_v49 = vpop.f32.mrf.mxu2  ;;  %v1456_v11 = vadd.f32 %v1390_v33, %v457_v24 }
  0xa0   : > { %v512_v40 = vsel %vm510_vm2, %v1395_v35, 0.0  ;;  %v532_v17 = vsel %vm510_vm2, %v1456_v11, 0.0 }
  0xa1   : > { %v513_v46 = vadd.f32 %v512_v40, %v511_v43 }
  0xa4   : > { %v1380_v26 = vpop.f32.mrf.mxu3 }
  0xa5   : > { %v435_v21 = vpop.f32.mrf.mxu0  ;;  %v460_v27 = vpop.f32.mrf.mxu1 }
  0xa6   : > { %v1401_v38 = vadd.f32 %v1390_v33, %v435_v21  ;;  %v477_v3 = vpop.f32.mrf.mxu2  ;;  %v1463_v15 = vadd.f32 %v1390_v33, %v460_v27 }
  0xa8   : > { %v514_v44 = vsel %vm510_vm2, %v1401_v38, 0.0  ;;  %v534_v20 = vsel %vm510_vm2, %v1463_v15, 0.0 }
  0xa9   : > { %v515_v50 = vadd.f32 %v514_v44, %v513_v46 }
  0xac   : > { %v1385_v30 = vpop.f32.mrf.mxu3 }
  0xad   : > { %v437_v23 = vpop.f32.mrf.mxu0  ;;  %v462_v31 = vpop.f32.mrf.mxu1 }
  0xae   : > { %v1406_v41 = vadd.f32 %v1390_v33, %v437_v23  ;;  %v1468_v18 = vadd.f32 %v1390_v33, %v462_v31  ;;  %v480_v24 = vpop.f32.mrf.mxu2  ;;  %v584_v31 = vld [vmem:[%s2059_s3 + $0x20] sm:$0xff] }
  0xaf   : > { %602 = vmatpush.msrb.mxu1 %v584_v31  ;;  %759 = vmatpush.msrb.mxu2 %v584_v31 }
  0xb0   : > { %v516_v47 = vsel %vm510_vm2, %v1406_v41, 0.0  ;;  %v536_v27 = vsel %vm510_vm2, %v1468_v18, 0.0 }
  0xb1   : > { %v517_v54 = vadd.f32 %v516_v47, %v515_v50  ;;  %603 = vmatpush.msrb.mxu1 %v583_v42  ;;  %760 = vmatpush.msrb.mxu2 %v583_v42  ;;  %v1497_v47 = vadd.f32 %v1390_v33, %v475_v49 }
  0xb3   : > { %v546_v60 = vsel %vm510_vm2, %v1497_v47, 0.0 }
  0xb4   : > { %v1392_v34 = vpop.f32.mrf.mxu3 }
  0xb5   : > { %v440_v25 = vpop.f32.mrf.mxu0  ;;  %v465_v36 = vpop.f32.mrf.mxu1 }
  0xb6   : > { %v1416_v45 = vadd.f32 %v1390_v33, %v440_v25  ;;  %v1473_v21 = vadd.f32 %v1390_v33, %v465_v36 }
  0xb8   : > { %v518_v52 = vsel %vm510_vm2, %v1416_v45, 0.0 }
  0xb9   : > { %v519_v59 = vadd.f32 %v518_v52, %v517_v54  ;;  %v1502_v54 = vadd.f32 %v1390_v33, %v477_v3  ;;  %v581_v3 = vld [vmem:[%s2059_s3 + $0x8] sm:$0xff] }
  0xbc   : > { %v1423_v51 = vpop.f32.mrf.mxu3 }
  0xbd   : > { %v442_v29 = vpop.f32.mrf.mxu0  ;;  %v467_v56 = vpop.f32.mrf.mxu1 }
  0xbe   : > { %v1421_v48 = vadd.f32 %v1390_v33, %v442_v29  ;;  %v1478_v28 = vadd.f32 %v1390_v33, %v467_v56 }
  0xc0   : > { %v520_v57 = vsel %vm510_vm2, %v1421_v48, 0.0  ;;  %v540_v43 = vsel %vm510_vm2, %v1478_v28, 0.0 }
  0xc1   : > { %v521_v63 = vadd.f32 %v520_v57, %v519_v59  ;;  %v482_v57 = vpop.f32.mrf.mxu2 }
  0xc4   : > { %v1447_v6 = vpop.f32.mrf.mxu3 }
  0xc5   : > { %v445_v32 = vpop.f32.mrf.mxu0  ;;  %v470_v10 = vpop.f32.mrf.mxu1 }
  0xc6   : > { %v1428_v53 = vadd.f32 %v1390_v33, %v445_v32  ;;  %v1486_v36 = vadd.f32 %v1390_v33, %v470_v10  ;;  %v580_v10 = vld [vmem:[%s2059_s3] sm:$0xff] }
  0xc8   : > { %v522_v61 = vsel %vm510_vm2, %v1428_v53, 0.0  ;;  %v542_v50 = vsel %vm510_vm2, %v1486_v36, 0.0 }
  0xc9   : > { %v523_v1 = vadd.f32 %v522_v61, %v521_v63  ;;  %v1509_v61 = vadd.f32 %v1390_v33, %v480_v24  ;;  %v548_v63 = vsel %vm510_vm2, %v1502_v54, 0.0 }
  0xcc   : > { %v500_v25 = vpop.f32.mrf.mxu3 }
  0xcd   : > { %v447_v39 = vpop.f32.mrf.mxu0  ;;  %v472_v32 = vpop.f32.mrf.mxu1 }
  0xce   : > { %v1433_v58 = vadd.f32 %v1390_v33, %v447_v39  ;;  %v538_v39 = vsel %vm510_vm2, %v1473_v21, 0.0  ;;  %v1494_v44 = vadd.f32 %v1390_v33, %v472_v32  ;;  %v1559_v32 = vadd.f32 %v1390_v33, %v1447_v6 }
  0xd0   : > { %v524_v0 = vsel %vm510_vm2, %v1433_v58, 0.0 }
  0xd1   : > { %v525_v4 = vadd.f32 %v524_v0, %v523_v1  ;;  %v1514_v0 = vadd.f32 %v1390_v33, %v482_v57 }
  0xd4   : > { %v502_v59 = vpop.f32.mrf.mxu3 }
  0xd5   : > { %v450_v55 = vpop.f32.mrf.mxu0  ;;  %v1569_v42 = vadd.f32 %v1390_v33, %v502_v59 }
  0xd6   : > { %v1441_v62 = vadd.f32 %v1390_v33, %v450_v55  ;;  %v544_v55 = vsel %vm510_vm2, %v1494_v44, 0.0 }
  0xd8   : > { %v526_v2 = vsel %vm510_vm2, %v1441_v62, 0.0 }
  0xd9   : > { %v527_v9 = vadd.f32 %v526_v2, %v525_v4  ;;  %v582_v2 = vld [vmem:[%s2059_s3 + $0x10] sm:$0xff]  ;;  %v1524_v4 = vadd.f32 %v1390_v33, %v1378_v22 }
  0xda   : > { %604 = vmatpush.msrb.mxu1 %v582_v2  ;;  %761 = vmatpush.msrb.mxu2 %v582_v2 }
  0xdc   : > { %605 = vmatpush.msrb.mxu1 %v581_v3  ;;  %762 = vmatpush.msrb.mxu2 %v581_v3 }
  0xdd   : > { %v452_v5 = vpop.f32.mrf.mxu0 }
  0xde   : > { %v1453_v8 = vadd.f32 %v1390_v33, %v452_v5  ;;  %v550_v5 = vsel %vm510_vm2, %v1509_v61, 0.0  ;;  %606 = vmatpush.msrb.mxu1 %v580_v10  ;;  %763 = vmatpush.msrb.mxu2 %v580_v10 }
  0xe0   : > { %v528_v12 = vsel %vm510_vm2, %v1453_v8, 0.0 }
  0xe1   : > { %v529_v13 = vadd.f32 %v528_v12, %v527_v9  ;;  %v1533_v12 = vadd.f32 %v1390_v33, %v1380_v26 }
  0xe3   : > { %v531_v16 = vadd.f32 %v530_v14, %v529_v13  ;;  %v552_v13 = vsel %vm510_vm2, %v1514_v0, 0.0  ;;  %v554_v14 = vsel %vm510_vm2, %v1524_v4, 0.0  ;;  %v556_v26 = vsel %vm510_vm2, %v1533_v12, 0.0 }
  0xe5   : > { %v533_v19 = vadd.f32 %v532_v17, %v531_v16  ;;  %v1541_v16 = vadd.f32 %v1390_v33, %v1385_v30 }
  0xe7   : > { %v535_v23 = vadd.f32 %v534_v20, %v533_v19  ;;  %v505_v19 = vpop.f32.mrf.mxu3  ;;  %v1547_v20 = vadd.f32 %v1390_v33, %v1392_v34  ;;  %v558_v24 = vsel %vm510_vm2, %v1541_v16, 0.0 }
  0xe9   : > { %v537_v29 = vadd.f32 %v536_v27, %v535_v23  ;;  %v1553_v27 = vadd.f32 %v1390_v33, %v1423_v51  ;;  %v564_v51 = vsel %vm510_vm2, %v1559_v32, 0.0 }
  0xeb   : > { %v539_v40 = vadd.f32 %v538_v39, %v537_v29  ;;  %v560_v29 = vsel %vm510_vm2, %v1547_v20, 0.0  ;;  %v562_v34 = vsel %vm510_vm2, %v1553_v27, 0.0  ;;  %v1564_v39 = vadd.f32 %v1390_v33, %v500_v25 }
  0xec   : > { %v568_v25 = vsel %vm510_vm2, %v1569_v42, 0.0 }
  0xed   : > { %v541_v46 = vadd.f32 %v540_v43, %v539_v40  ;;  %v566_v6 = vsel %vm510_vm2, %v1564_v39, 0.0 }
  0xef   : > { %v543_v52 = vadd.f32 %v542_v50, %v541_v46  ;;  %v507_v46 = vpop.f32.mrf.mxu3  ;;  %v1574_v50 = vadd.f32 %v1390_v33, %v505_v19 }
  0xf1   : > { %v545_v56 = vadd.f32 %v544_v55, %v543_v52  ;;  %v1579_v55 = vadd.f32 %v1390_v33, %v507_v46  ;;  %v570_v57 = vsel %vm510_vm2, %v1574_v50, 0.0 }
  0xf3   : > { %v547_v49 = vadd.f32 %v546_v60, %v545_v56  ;;  %v572_v60 = vsel %vm510_vm2, %v1579_v55, 0.0 }
  0xf5   : > { %v549_v1 = vadd.f32 %v548_v63, %v547_v49 }
  0xf7   : > { %v551_v9 = vadd.f32 %v550_v5, %v549_v1 }
  0xf9   : > { %v553_v22 = vadd.f32 %v552_v13, %v551_v9 }
  0xfb   : > { %v555_v17 = vadd.f32 %v554_v14, %v553_v22 }
  0xfd   : > { %v557_v23 = vadd.f32 %v556_v26, %v555_v17 }
  0xff   : > { %v559_v30 = vadd.f32 %v558_v24, %v557_v23 }
 0x101   : > { %v561_v31 = vadd.f32 %v560_v29, %v559_v30 }
 0x103   : > { %v563_v40 = vadd.f32 %v562_v34, %v561_v31 }
 0x105   : > { %v565_v43 = vadd.f32 %v564_v51, %v563_v40 }
 0x107   : > { %v567_v52 = vadd.f32 %v566_v6, %v565_v43 }
 0x109   : > { %v569_v56 = vadd.f32 %v568_v25, %v567_v52 }
 0x10b   : > { %v571_v59 = vadd.f32 %v570_v57, %v569_v56 }
 0x10d   : > { %v573_v49 = vadd.f32 %v572_v60, %v571_v59 }
 0x10f   : > { %v574_v63 = vrot.slane %v573_v49, 4 }
 0x111   : > { %v575_v1 = vadd.f32 %v574_v63, %v573_v49 }
 0x113   : > { %v576_v2 = vrot.slane %v575_v1, 2 }
 0x115   : > { %v577_v3 = vadd.f32 %v576_v2, %v575_v1 }
 0x117   : > { %v578_v5 = vrot.slane %v577_v3, 1 }
 0x119   : > { %v579_v9 = vadd.f32 %v578_v5, %v577_v3 }
 0x11b   : > { %1113 = vmatmul.msk.f32.vlgmr.msrb.gmra.mxu1 %vm510_vm2, %v579_v9 }
 0x198   : > { %v608_v10 = vpop.f32.mrf.mxu1 }
 0x199   : > { %v1586_v33 = vperm.slane %v608_v10, 0 }
 0x19b   : > { %v1590_v13 = vsub.f32 %v1398_v37, %v1586_v33  ;;  %v1594_v22 = vsub.f32 %v1395_v35, %v1586_v33  ;;  %v1598_v14 = vsub.f32 %v1401_v38, %v1586_v33  ;;  %v1602_v17 = vsub.f32 %v1406_v41, %v1586_v33 }
 0x19c   : > { %v1610_v37 = vsub.f32 %v1416_v45, %v1586_v33  ;;  %v1616_v38 = vsub.f32 %v1421_v48, %v1586_v33  ;;  %v1624_v29 = vsub.f32 %v1428_v53, %v1586_v33  ;;  %v1631_v48 = vsub.f32 %v1433_v58, %v1586_v33 }
 0x19d   : > { %v644_v19 = vmul.f32 %v1590_v13, %v1590_v13  ;;  %v645_v26 = vmul.f32 %v1594_v22, %v1594_v22  ;;  %v646_v35 = vmul.f32 %v1598_v14, %v1598_v14  ;;  %v647_v41 = vmul.f32 %v1602_v17, %v1602_v17 }
 0x19e   : > { %v648_v45 = vmul.f32 %v1610_v37, %v1610_v37  ;;  %v649_v40 = vmul.f32 %v1616_v38, %v1616_v38  ;;  %v1638_v53 = vsub.f32 %v1441_v62, %v1586_v33  ;;  %v650_v46 = vmul.f32 %v1624_v29, %v1624_v29 }
 0x19f   : > { %v676_v23 = vsel %vm510_vm2, %v644_v19, 0.0  ;;  %v677_v24 = vsel %vm510_vm2, %v645_v26, 0.0  ;;  %v679_v31 = vsel %vm510_vm2, %v646_v35, 0.0  ;;  %v681_v51 = vsel %vm510_vm2, %v647_v41, 0.0 }
 0x1a0   : > { %v678_v30 = vadd.f32 %v677_v24, %v676_v23  ;;  %v683_v6 = vsel %vm510_vm2, %v648_v45, 0.0  ;;  %v1645_v58 = vsub.f32 %v1453_v8, %v1586_v33  ;;  %v651_v25 = vmul.f32 %v1631_v48, %v1631_v48 }
 0x1a1   : > { %v685_v56 = vsel %vm510_vm2, %v649_v40, 0.0  ;;  %v1652_v62 = vsub.f32 %v1450_v7, %v1586_v33  ;;  %v652_v59 = vmul.f32 %v1638_v53, %v1638_v53  ;;  %v687_v60 = vsel %vm510_vm2, %v650_v46, 0.0 }
 0x1a2   : > { %v680_v34 = vadd.f32 %v679_v31, %v678_v30  ;;  %v1659_v8 = vsub.f32 %v1456_v11, %v1586_v33  ;;  %v653_v63 = vmul.f32 %v1645_v58, %v1645_v58  ;;  %v689_v1 = vsel %vm510_vm2, %v651_v25, 0.0 }
 0x1a3   : > { %v1666_v7 = vsub.f32 %v1463_v15, %v1586_v33  ;;  %v654_v3 = vmul.f32 %v1652_v62, %v1652_v62  ;;  %v691_v5 = vsel %vm510_vm2, %v652_v59, 0.0  ;;  %v1673_v11 = vsub.f32 %v1468_v18, %v1586_v33 }
 0x1a4   : > { %v682_v43 = vadd.f32 %v681_v51, %v680_v34  ;;  %v655_v10 = vmul.f32 %v1659_v8, %v1659_v8  ;;  %v693_v19 = vsel %vm510_vm2, %v653_v63, 0.0  ;;  %v1680_v15 = vsub.f32 %v1473_v21, %v1586_v33 }
 0x1a5   : > { %v656_v35 = vmul.f32 %v1666_v7, %v1666_v7  ;;  %v695_v41 = vsel %vm510_vm2, %v654_v3, 0.0  ;;  %v1687_v18 = vsub.f32 %v1478_v28, %v1586_v33  ;;  %v657_v24 = vmul.f32 %v1673_v11, %v1673_v11 }
 0x1a6   : > { %v684_v52 = vadd.f32 %v683_v6, %v682_v43  ;;  %v697_v30 = vsel %vm510_vm2, %v655_v10, 0.0  ;;  %v1694_v21 = vsub.f32 %v1486_v36, %v1586_v33  ;;  %v658_v31 = vmul.f32 %v1680_v15, %v1680_v15 }
 0x1a7   : > { %v699_v34 = vsel %vm510_vm2, %v656_v35, 0.0  ;;  %v1701_v28 = vsub.f32 %v1494_v44, %v1586_v33  ;;  %v659_v51 = vmul.f32 %v1687_v18, %v1687_v18  ;;  %v701_v43 = vsel %vm510_vm2, %v657_v24, 0.0 }
 0x1a8   : > { %v686_v57 = vadd.f32 %v685_v56, %v684_v52  ;;  %v1708_v36 = vsub.f32 %v1497_v47, %v1586_v33  ;;  %v660_v6 = vmul.f32 %v1694_v21, %v1694_v21  ;;  %v703_v52 = vsel %vm510_vm2, %v658_v31, 0.0 }
 0x1a9   : > { %v1715_v44 = vsub.f32 %v1502_v54, %v1586_v33  ;;  %v661_v56 = vmul.f32 %v1701_v28, %v1701_v28  ;;  %v1722_v47 = vsub.f32 %v1509_v61, %v1586_v33  ;;  %v1729_v54 = vsub.f32 %v1514_v0, %v1586_v33 }
 0x1aa   : > { %v688_v49 = vadd.f32 %v687_v60, %v686_v57  ;;  %v705_v57 = vsel %vm510_vm2, %v659_v51, 0.0  ;;  %v662_v60 = vmul.f32 %v1708_v36, %v1708_v36  ;;  %v1736_v61 = vsub.f32 %v1524_v4, %v1586_v33 }
 0x1ab   : > { %v1743_v0 = vsub.f32 %v1533_v12, %v1586_v33  ;;  %v1750_v4 = vsub.f32 %v1541_v16, %v1586_v33  ;;  %v1757_v12 = vsub.f32 %v1547_v20, %v1586_v33  ;;  %v1764_v16 = vsub.f32 %v1553_v27, %v1586_v33 }
 0x1ac   : > { %v690_v2 = vadd.f32 %v689_v1, %v688_v49  ;;  %v707_v49 = vsel %vm510_vm2, %v660_v6, 0.0  ;;  %v663_v1 = vmul.f32 %v1715_v44, %v1715_v44  ;;  %v1771_v20 = vsub.f32 %v1559_v32, %v1586_v33 }
 0x1ad   : > { %v1778_v27 = vsub.f32 %v1564_v39, %v1586_v33  ;;  %v1785_v32 = vsub.f32 %v1569_v42, %v1586_v33  ;;  %v1792_v39 = vsub.f32 %v1574_v50, %v1586_v33  ;;  %v1799_v42 = vsub.f32 %v1579_v55, %v1586_v33 }
 0x1ae   : > { %v692_v9 = vadd.f32 %v691_v5, %v690_v2  ;;  %v709_v2 = vsel %vm510_vm2, %v661_v56, 0.0  ;;  %v664_v5 = vmul.f32 %v1722_v47, %v1722_v47 }
 0x1af   : > { %v674_v50 = vmul.f32 %v1792_v39, %v1792_v39 }
 0x1b0   : > { %v694_v26 = vadd.f32 %v693_v19, %v692_v9  ;;  %v711_v9 = vsel %vm510_vm2, %v662_v60, 0.0  ;;  %v665_v19 = vmul.f32 %v1729_v54, %v1729_v54 }
 0x1b1   : > { %v735_v55 = vsel %vm510_vm2, %v674_v50, 0.0 }
 0x1b2   : > { %v696_v23 = vadd.f32 %v695_v41, %v694_v26  ;;  %v713_v26 = vsel %vm510_vm2, %v663_v1, 0.0  ;;  %v666_v41 = vmul.f32 %v1736_v61, %v1736_v61 }
 0x1b4   : > { %v698_v45 = vadd.f32 %v697_v30, %v696_v23  ;;  %v715_v23 = vsel %vm510_vm2, %v664_v5, 0.0  ;;  %v667_v30 = vmul.f32 %v1743_v0, %v1743_v0 }
 0x1b6   : > { %v700_v40 = vadd.f32 %v699_v34, %v698_v45  ;;  %v717_v45 = vsel %vm510_vm2, %v665_v19, 0.0  ;;  %v668_v34 = vmul.f32 %v1750_v4, %v1750_v4  ;;  %v675_v19 = vmul.f32 %v1799_v42, %v1799_v42 }
 0x1b8   : > { %v702_v46 = vadd.f32 %v701_v43, %v700_v40  ;;  %v719_v40 = vsel %vm510_vm2, %v666_v41, 0.0  ;;  %v669_v43 = vmul.f32 %v1757_v12, %v1757_v12  ;;  %v737_v41 = vsel %vm510_vm2, %v675_v19, 0.0 }
 0x1ba   : > { %v704_v25 = vadd.f32 %v703_v52, %v702_v46  ;;  %v721_v46 = vsel %vm510_vm2, %v667_v30, 0.0  ;;  %v670_v52 = vmul.f32 %v1764_v16, %v1764_v16 }
 0x1bc   : > { %v706_v59 = vadd.f32 %v705_v57, %v704_v25  ;;  %v723_v25 = vsel %vm510_vm2, %v668_v34, 0.0  ;;  %v671_v57 = vmul.f32 %v1771_v20, %v1771_v20 }
 0x1be   : > { %v708_v63 = vadd.f32 %v707_v49, %v706_v59  ;;  %v725_v59 = vsel %vm510_vm2, %v669_v43, 0.0  ;;  %v672_v49 = vmul.f32 %v1778_v27, %v1778_v27 }
 0x1c0   : > { %v710_v3 = vadd.f32 %v709_v2, %v708_v63  ;;  %v727_v63 = vsel %vm510_vm2, %v670_v52, 0.0  ;;  %v673_v2 = vmul.f32 %v1785_v32, %v1785_v32 }
 0x1c2   : > { %v712_v10 = vadd.f32 %v711_v9, %v710_v3  ;;  %v729_v3 = vsel %vm510_vm2, %v671_v57, 0.0  ;;  %v731_v9 = vsel %vm510_vm2, %v672_v49, 0.0  ;;  %v1818_v49 = vld [vmem:[%s2060_s4] ss:$0 sm:$0xff] }
 0x1c4   : > { %v714_v35 = vadd.f32 %v713_v26, %v712_v10  ;;  %v733_v26 = vsel %vm510_vm2, %v673_v2, 0.0 }
 0x1c6   : > { %v716_v24 = vadd.f32 %v715_v23, %v714_v35 }
 0x1c8   : > { %v718_v31 = vadd.f32 %v717_v45, %v716_v24 }
 0x1ca   : > { %v720_v51 = vadd.f32 %v719_v40, %v718_v31 }
 0x1cc   : > { %v722_v6 = vadd.f32 %v721_v46, %v720_v51 }
 0x1ce   : > { %v724_v56 = vadd.f32 %v723_v25, %v722_v6 }
 0x1d0   : > { %v726_v60 = vadd.f32 %v725_v59, %v724_v56 }
 0x1d2   : > { %v728_v1 = vadd.f32 %v727_v63, %v726_v60 }
 0x1d4   : > { %v730_v5 = vadd.f32 %v729_v3, %v728_v1 }
 0x1d6   : > { %v732_v10 = vadd.f32 %v731_v9, %v730_v5 }
 0x1d8   : > { %v734_v35 = vadd.f32 %v733_v26, %v732_v10 }
 0x1da   : > { %v736_v33 = vadd.f32 %v735_v55, %v734_v35 }
 0x1dc   : > { %v738_v23 = vadd.f32 %v737_v41, %v736_v33 }
 0x1de   : > { %v739_v24 = vrot.slane %v738_v23, 4 }
 0x1e0   : > { %v740_v30 = vadd.f32 %v739_v24, %v738_v23 }
 0x1e2   : > { %v741_v45 = vrot.slane %v740_v30, 2 }
 0x1e4   : > { %v742_v31 = vadd.f32 %v741_v45, %v740_v30 }
 0x1e6   : > { %v743_v34 = vrot.slane %v742_v31, 1 }
 0x1e8   : > { %v744_v40 = vadd.f32 %v743_v34, %v742_v31 }
 0x1ea   : > { %1114 = vmatmul.msk.f32.vlgmr.msrb.gmra.mxu2 %vm510_vm2, %v744_v40 }
 0x26d   : > { %v765_v51 = vpop.f32.mrf.mxu2 }
 0x26e   : > { %v766_v43 = vadd.f32 1e-05, %v765_v51 }
 0x270   : > { %1185 = vrsqrt.f32 %v766_v43  ;;  %vm774_vm4 = vweird.f32 %v766_v43 }
 0x276   : > { %v1186_v46 = vpop.eup %1185 }
 0x277   : > { %v769_v6 = vmul.f32 %v1186_v46, %v766_v43  ;;  %vm775_vm3 = vweird.f32 %v1186_v46 }
 0x278   : > { %vm776_vm5 = vmor %vm774_vm4, %vm775_vm3 }
 0x279   : > { %v770_v52 = vmul.f32 %v1186_v46, %v769_v6 }
 0x27b   : > { %v771_v25 = vmul.f32 0.5, %v770_v52 }
 0x27d   : > { %v772_v56 = vsub.f32 1.5, %v771_v25 }
 0x27f   : > { %v773_v57 = vmul.f32 %v1186_v46, %v772_v56 }
 0x281   : > { %v777_v59 = vsel %vm776_vm5, %v1186_v46, %v773_v57 }
 0x282   : > { %v1813_v60 = vperm.slane %v777_v59, 0 }
 0x284   : > { %v779_v63 = vmul.f32 %v1813_v60, %v1590_v13  ;;  %v780_v1 = vmul.f32 %v1813_v60, %v1594_v22  ;;  %v781_v2 = vmul.f32 %v1813_v60, %v1598_v14  ;;  %v782_v3 = vmul.f32 %v1813_v60, %v1602_v17  ;;  %v1835_v13 = vld [vmem:[%s2061_s5] ss:$0 sm:$0xff] }
 0x285   : > { %v783_v5 = vmul.f32 %v1813_v60, %v1610_v37  ;;  %v784_v50 = vmul.f32 %v1813_v60, %v1616_v38  ;;  %v785_v22 = vmul.f32 %v1813_v60, %v1624_v29  ;;  %v786_v37 = vmul.f32 %v1813_v60, %v1631_v48 }
 0x286   : > { %v815_v14 = vmul.f32 %v1818_v49, %v779_v63  ;;  %v816_v9 = vmul.f32 %v1818_v49, %v780_v1  ;;  %v817_v17 = vmul.f32 %v1818_v49, %v781_v2  ;;  %v818_v38 = vmul.f32 %v1818_v49, %v782_v3 }
 0x287   : > { %v787_v10 = vmul.f32 %v1813_v60, %v1638_v53  ;;  %v819_v19 = vmul.f32 %v1818_v49, %v783_v5  ;;  %v788_v29 = vmul.f32 %v1813_v60, %v1645_v58  ;;  %v789_v26 = vmul.f32 %v1813_v60, %v1652_v62 }
 0x288   : > { %v820_v35 = vmul.f32 %v1818_v49, %v784_v50  ;;  %v821_v55 = vmul.f32 %v1818_v49, %v785_v22  ;;  %v851_v48 = vadd.f32 %v1835_v13, %v815_v14  ;;  %v852_v33 = vadd.f32 %v1835_v13, %v816_v9 }
 0x289   : > { %v853_v53 = vadd.f32 %v1835_v13, %v817_v17  ;;  %v790_v41 = vmul.f32 %v1813_v60, %v1659_v8  ;;  %v822_v58 = vmul.f32 %v1818_v49, %v786_v37  ;;  %v854_v62 = vadd.f32 %v1835_v13, %v818_v38 }
 0x28a   : > { %v791_v23 = vmul.f32 %v1813_v60, %v1666_v7  ;;  %v792_v24 = vmul.f32 %v1813_v60, %v1673_v11  ;;  %v823_v30 = vmul.f32 %v1818_v49, %v787_v10  ;;  %v855_v45 = vadd.f32 %v1835_v13, %v819_v19 }
 0x28b   : > { %v793_v31 = vmul.f32 %v1813_v60, %v1680_v15  ;;  %v824_v34 = vmul.f32 %v1818_v49, %v788_v29  ;;  %v825_v8 = vmul.f32 %v1818_v49, %v789_v26  ;;  %v856_v40 = vadd.f32 %v1835_v13, %v820_v35 }
 0x28c   : > { %v857_v51 = vadd.f32 %v1835_v13, %v821_v55  ;;  %v883_v43 = vpack.c.bf16 %v851_v48, %v851_v48  ;;  %v884_v7 = vpack.c.bf16 %v852_v33, %v852_v33  ;;  %v885_v46 = vpack.c.bf16 %v853_v53, %v853_v53 }
 0x28d   : > { %v794_v11 = vmul.f32 %v1813_v60, %v1687_v18  ;;  %v826_v6 = vmul.f32 %v1818_v49, %v790_v41  ;;  %v858_v52 = vadd.f32 %v1835_v13, %v822_v58  ;;  %v886_v25 = vpack.c.bf16 %v854_v62, %v854_v62 }
 0x28e   : > { %v795_v15 = vmul.f32 %v1813_v60, %v1694_v21  ;;  %v827_v56 = vmul.f32 %v1818_v49, %v791_v23  ;;  %v859_v57 = vadd.f32 %v1835_v13, %v823_v30  ;;  %v887_v59 = vpack.c.bf16 %v855_v45, %v855_v45  ;;  %916 = vst.msk [vmem:[%s1884_s10] sm:$0xf] %vm915_vm6, %v883_v43 }
 0x28f   : > { %v796_v18 = vmul.f32 %v1813_v60, %v1701_v28  ;;  %v828_v63 = vmul.f32 %v1818_v49, %v792_v24  ;;  %v860_v21 = vadd.f32 %v1835_v13, %v824_v34  ;;  %v888_v1 = vpack.c.bf16 %v856_v40, %v856_v40  ;;  %917 = vst.msk [vmem:[%s1884_s10 + $0x4] sm:$0xf] %vm915_vm6, %v884_v7 }
 0x290   : > { %v797_v2 = vmul.f32 %v1813_v60, %v1708_v36  ;;  %v829_v3 = vmul.f32 %v1818_v49, %v793_v31  ;;  %v861_v5 = vadd.f32 %v1835_v13, %v825_v8  ;;  %v889_v50 = vpack.c.bf16 %v857_v51, %v857_v51  ;;  %918 = vst.msk [vmem:[%s1884_s10 + $0x8] sm:$0xf] %vm915_vm6, %v885_v46 }
 0x291   : > { %v798_v28 = vmul.f32 %v1813_v60, %v1715_v44  ;;  %v830_v22 = vmul.f32 %v1818_v49, %v794_v11  ;;  %v862_v14 = vadd.f32 %v1835_v13, %v826_v6  ;;  %v890_v9 = vpack.c.bf16 %v858_v52, %v858_v52  ;;  %919 = vst.msk [vmem:[%s1884_s10 + $0xc] sm:$0xf] %vm915_vm6, %v886_v25 }
 0x292   : > { %v799_v36 = vmul.f32 %v1813_v60, %v1722_v47  ;;  %v831_v17 = vmul.f32 %v1818_v49, %v795_v15  ;;  %v863_v37 = vadd.f32 %v1835_v13, %v827_v56  ;;  %v891_v38 = vpack.c.bf16 %v859_v57, %v859_v57  ;;  %920 = vst.msk [vmem:[%s1884_s10 + $0x10] sm:$0xf] %vm915_vm6, %v887_v59 }
 0x293   : > { %v800_v44 = vmul.f32 %v1813_v60, %v1729_v54  ;;  %v832_v10 = vmul.f32 %v1818_v49, %v796_v18  ;;  %v864_v19 = vadd.f32 %v1835_v13, %v828_v63  ;;  %v892_v29 = vpack.c.bf16 %v860_v21, %v860_v21  ;;  %921 = vst.msk [vmem:[%s1884_s10 + $0x14] sm:$0xf] %vm915_vm6, %v888_v1 }
 0x294   : > { %v801_v47 = vmul.f32 %v1813_v60, %v1736_v61  ;;  %v833_v26 = vmul.f32 %v1818_v49, %v797_v2  ;;  %v865_v35 = vadd.f32 %v1835_v13, %v829_v3  ;;  %v893_v55 = vpack.c.bf16 %v861_v5, %v861_v5  ;;  %922 = vst.msk [vmem:[%s1884_s10 + $0x18] sm:$0xf] %vm915_vm6, %v889_v50 }
 0x295   : > { %v802_v54 = vmul.f32 %v1813_v60, %v1743_v0  ;;  %v834_v48 = vmul.f32 %v1818_v49, %v798_v28  ;;  %v866_v33 = vadd.f32 %v1835_v13, %v830_v22  ;;  %v894_v53 = vpack.c.bf16 %v862_v14, %v862_v14  ;;  %923 = vst.msk [vmem:[%s1884_s10 + $0x1c] sm:$0xf] %vm915_vm6, %v890_v9 }
 0x296   : > { %v803_v61 = vmul.f32 %v1813_v60, %v1750_v4  ;;  %v835_v41 = vmul.f32 %v1818_v49, %v799_v36  ;;  %v867_v58 = vadd.f32 %v1835_v13, %v831_v17  ;;  %v895_v62 = vpack.c.bf16 %v863_v37, %v863_v37  ;;  %924 = vst.msk [vmem:[%s1884_s10 + $0x20] sm:$0xf] %vm915_vm6, %v891_v38 }
 0x297   : > { %v804_v0 = vmul.f32 %v1813_v60, %v1757_v12  ;;  %v836_v23 = vmul.f32 %v1818_v49, %v800_v44  ;;  %v868_v24 = vadd.f32 %v1835_v13, %v832_v10  ;;  %v896_v30 = vpack.c.bf16 %v864_v19, %v864_v19  ;;  %925 = vst.msk [vmem:[%s1884_s10 + $0x24] sm:$0xf] %vm915_vm6, %v892_v29 }
 0x298   : > { %v805_v4 = vmul.f32 %v1813_v60, %v1764_v16  ;;  %v837_v45 = vmul.f32 %v1818_v49, %v801_v47  ;;  %v869_v31 = vadd.f32 %v1835_v13, %v833_v26  ;;  %v897_v34 = vpack.c.bf16 %v865_v35, %v865_v35  ;;  %926 = vst.msk [vmem:[%s1884_s10 + $0x28] sm:$0xf] %vm915_vm6, %v893_v55 }
 0x299   : > { %v806_v12 = vmul.f32 %v1813_v60, %v1771_v20  ;;  %v838_v8 = vmul.f32 %v1818_v49, %v802_v54  ;;  %v870_v40 = vadd.f32 %v1835_v13, %v834_v48  ;;  %v898_v51 = vpack.c.bf16 %v866_v33, %v866_v33  ;;  %927 = vst.msk [vmem:[%s1884_s10 + $0x2c] sm:$0xf] %vm915_vm6, %v894_v53 }
 0x29a   : > { %v807_v16 = vmul.f32 %v1813_v60, %v1778_v27  ;;  %v839_v43 = vmul.f32 %v1818_v49, %v803_v61  ;;  %v871_v7 = vadd.f32 %v1835_v13, %v835_v41  ;;  %v899_v46 = vpack.c.bf16 %v867_v58, %v867_v58  ;;  %928 = vst.msk [vmem:[%s1884_s10 + $0x30] sm:$0xf] %vm915_vm6, %v895_v62 }
 0x29b   : > { %v808_v20 = vmul.f32 %v1813_v60, %v1785_v32  ;;  %v840_v11 = vmul.f32 %v1818_v49, %v804_v0  ;;  %v872_v6 = vadd.f32 %v1835_v13, %v836_v23  ;;  %v900_v52 = vpack.c.bf16 %v868_v24, %v868_v24  ;;  %929 = vst.msk [vmem:[%s1884_s10 + $0x34] sm:$0xf] %vm915_vm6, %v896_v30 }
 0x29c   : > { %v809_v27 = vmul.f32 %v1813_v60, %v1792_v39  ;;  %v841_v25 = vmul.f32 %v1818_v49, %v805_v4  ;;  %v873_v15 = vadd.f32 %v1835_v13, %v837_v45  ;;  %v901_v56 = vpack.c.bf16 %v869_v31, %v869_v31  ;;  %930 = vst.msk [vmem:[%s1884_s10 + $0x38] sm:$0xf] %vm915_vm6, %v897_v34 }
 0x29d   : > { %v810_v32 = vmul.f32 %v1813_v60, %v1799_v42  ;;  %v842_v57 = vmul.f32 %v1818_v49, %v806_v12  ;;  %v874_v59 = vadd.f32 %v1835_v13, %v838_v8  ;;  %v902_v18 = vpack.c.bf16 %v870_v40, %v870_v40  ;;  %931 = vst.msk [vmem:[%s1884_s10 + $0x3c] sm:$0xf] %vm915_vm6, %v898_v51 }
 0x29e   : > { %v843_v39 = vmul.f32 %v1818_v49, %v807_v16  ;;  %v875_v63 = vadd.f32 %v1835_v13, %v839_v43  ;;  %v903_v21 = vpack.c.bf16 %v871_v7, %v871_v7  ;;  %932 = vst.msk [vmem:[%s1884_s10 + $0x40] sm:$0xf] %vm915_vm6, %v899_v46  ;;  %v844_v42 = vmul.f32 %v1818_v49, %v808_v20 }
 0x29f   : > { %v876_v60 = vadd.f32 %v1835_v13, %v840_v11  ;;  %v904_v1 = vpack.c.bf16 %v872_v6, %v872_v6  ;;  %933 = vst.msk [vmem:[%s1884_s10 + $0x44] sm:$0xf] %vm915_vm6, %v900_v52  ;;  %v845_v2 = vmul.f32 %v1818_v49, %v809_v27  ;;  %v877_v3 = vadd.f32 %v1835_v13, %v841_v25 }
 0x2a0   : > { %v905_v5 = vpack.c.bf16 %v873_v15, %v873_v15  ;;  %934 = vst.msk [vmem:[%s1884_s10 + $0x48] sm:$0xf] %vm915_vm6, %v901_v56  ;;  %v846_v50 = vmul.f32 %v1818_v49, %v810_v32  ;;  %v878_v28 = vadd.f32 %v1835_v13, %v842_v57  ;;  %v906_v22 = vpack.c.bf16 %v874_v59, %v874_v59 }
 0x2a1   : > { %935 = vst.msk [vmem:[%s1884_s10 + $0x4c] sm:$0xf] %vm915_vm6, %v902_v18  ;;  %v879_v14 = vadd.f32 %v1835_v13, %v843_v39  ;;  %v907_v9 = vpack.c.bf16 %v875_v63, %v875_v63  ;;  %v880_v36 = vadd.f32 %v1835_v13, %v844_v42  ;;  %v908_v17 = vpack.c.bf16 %v876_v60, %v876_v60 }
 0x2a2   : > { %936 = vst.msk [vmem:[%s1884_s10 + $0x50] sm:$0xf] %vm915_vm6, %v903_v21  ;;  %v881_v49 = vadd.f32 %v1835_v13, %v845_v2  ;;  %v909_v37 = vpack.c.bf16 %v877_v3, %v877_v3  ;;  %v882_v38 = vadd.f32 %v1835_v13, %v846_v50  ;;  %v910_v44 = vpack.c.bf16 %v878_v28, %v878_v28 }
 0x2a3   : > { %937 = vst.msk [vmem:[%s1884_s10 + $0x54] sm:$0xf] %vm915_vm6, %v904_v1  ;;  %v911_v10 = vpack.c.bf16 %v879_v14, %v879_v14  ;;  %v912_v19 = vpack.c.bf16 %v880_v36, %v880_v36 }
 0x2a4   : > { %938 = vst.msk [vmem:[%s1884_s10 + $0x58] sm:$0xf] %vm915_vm6, %v905_v5  ;;  %v913_v29 = vpack.c.bf16 %v881_v49, %v881_v49  ;;  %v914_v13 = vpack.c.bf16 %v882_v38, %v882_v38 }
 0x2a5   : > { %939 = vst.msk [vmem:[%s1884_s10 + $0x5c] sm:$0xf] %vm915_vm6, %v906_v22 }
 0x2a6   : > { %940 = vst.msk [vmem:[%s1884_s10 + $0x60] sm:$0xf] %vm915_vm6, %v907_v9 }
 0x2a7   : > { %941 = vst.msk [vmem:[%s1884_s10 + $0x64] sm:$0xf] %vm915_vm6, %v908_v17 }
 0x2a8   : > { %942 = vst.msk [vmem:[%s1884_s10 + $0x68] sm:$0xf] %vm915_vm6, %v909_v37 }
 0x2a9   : > { %943 = vst.msk [vmem:[%s1884_s10 + $0x6c] sm:$0xf] %vm915_vm6, %v910_v44 }
 0x2aa   : > { %944 = vst.msk [vmem:[%s1884_s10 + $0x70] sm:$0xf] %vm915_vm6, %v911_v10 }
 0x2ab   : > { %945 = vst.msk [vmem:[%s1884_s10 + $0x74] sm:$0xf] %vm915_vm6, %v912_v19 }
 0x2ac   : > { %946 = vst.msk [vmem:[%s1884_s10 + $0x78] sm:$0xf] %vm915_vm6, %v913_v29 }
 0x2ad   : > { %947 = vst.msk [vmem:[%s1884_s10 + $0x7c] sm:$0xf] %vm915_vm6, %v914_v13 }
 0x2ae   : > { %1214 = shalt.err (!%p1211_p3)
}
 0x2af   : > { %s1251_s29 = smov 64   ;;  %s1252_s10 = smov 4  }
 0x2b0   : > { %1141 = dma.vmem_to_hbm [thread:$0]  (%p1326_p5), %s962_s14, 2048, %s964_s15, %s949_s16, %s1251_s29, %s1251_s29, %s1252_s10  }
 0x2b1 PF: > { %p1147_p4 = scmp.ge.s32.totalorder %s1249_s24, 2  ;;  %s978_s11 = sand.u32 1, %s1237_s21  }
 0x2b2   : > { %s979_s25 = scalar_lea.sflag [#allocation3], %s978_s11 }
 0x2b3   : > { %p1144_p7 = pnand %p1147_p4, %p1330_p6 }
 0x2b5   : > { %p1145_p8 = pneg %p1144_p7 }
 0x2b7   : > { %1232 = dma.done.wait (%p1145_p8), %s979_s25, 2048  }
 0x2b8   : > { %1234 = vsyncadd (%p1145_p8), %s979_s25, 4294965248  ;;  %p16_p9 = scmp.ge.s32.totalorder %s1313_s27, 6   ;;  %s2065_s21 = smov %s1241_s22 }
 0x2b9   : > { %s2066_s22 = smov %s1245_s23  ;;  %s2067_s23 = smov %s1324_s30 }
 0x2ba   : > { %s2068_s24 = smov %s1313_s27  ;;  %18 = sbr.rel (!%p16_p9) target bundleno = 3 (0x3), region = 79 }
 0x2bf   :  { %985 = vsyncpa [#allocation3], 1 }
 0x2c0   :  { %987 = vsyncpa [#allocation3 + $0x1], 1 }

</bundles_post_ra>
